<compile_context>
chip_gen: v6e
topology: v6e:2x2x1
jax: 0.10.0
libtpu: 0.0.40
codegen_flags: <defaults>
</compile_context>

<pallas_src>
import jax
import jax.numpy as jnp
from jax.experimental import pallas as pl
from jax.experimental.pallas import tpu as pltpu

_LANE = 128


def _cdiv(a, b):
    return -(-a // b)


def _ceil_to(x, m):
    return _cdiv(x, m) * m


def _num_tensorcores():
    """Best-effort TensorCores-per-device (v7x megacore detection). Defaults to 1."""
    try:
        info = pltpu.get_tpu_info()
        for name in ("num_cores", "num_tensorcores", "tensorcore_count", "cores_per_chip"):
            v = getattr(info, name, None)
            if isinstance(v, int) and 0 < v <= 8:
                return v
    except Exception:
        pass
    try:
        kind = jax.devices()[0].device_kind.lower()
        if any(tag in kind for tag in ("v4", "v5p", "v7")):
            return 2
    except Exception:
        pass
    return 1


def _pick_batch_tile(B, num_tc, tb_max):
    """Lane-aligned batch tile: one big tile on 1-TC chips, even per-core tiles on v7x."""
    if num_tc > 1 and B > _LANE:
        tiles = num_tc * max(1, _cdiv(B, num_tc * tb_max))
        tb = _ceil_to(_cdiv(B, tiles), _LANE)
    else:
        tb = _ceil_to(B, _LANE)
    return max(_LANE, min(tb, tb_max))


# ---------------------------------------------------------------------------
# Kernel: fused (embedding-folded) fc1 + fc2/fc3/fc4 in feature-major layout.
# ---------------------------------------------------------------------------
def mlp_kernel(x_ref, w1f_ref, w2_ref, b2_ref, w3_ref, b3_ref, w4_ref, b4_ref, o_ref):
    # x_ref: (d_small + 1, tb) f32, rows = [routes | day | sched | prev | stop_id].
    d_small = x_ref.shape[0] - 1
    ns = w1f_ref.shape[1] - d_small
    tb = x_ref.shape[1]

    xs = x_ref[:d_small, :]                                # (d_small, tb)
    sid = x_ref[d_small:, :].astype(jnp.int32)             # (1, tb); exact for ids < 2**24

    # Embedding gather as one-hot rows, fused with the small-feature block so the
    # whole fc1 (+ folded b1) is a single MXU matmul.
    onehot = (jax.lax.broadcasted_iota(jnp.int32, (ns, tb), 0) == sid).astype(jnp.float32)
    op = jnp.concatenate([xs, onehot], axis=0)             # (d_small + ns, tb)

    h = jnp.dot(w1f_ref[...], op, preferred_element_type=jnp.float32)         # (128, tb)
    h = jnp.maximum(h, 0.0)
    h = jnp.maximum(jnp.dot(w2_ref[...], h, preferred_element_type=jnp.float32)
                    + b2_ref[...], 0.0)                                        # (64, tb)
    h = jnp.maximum(jnp.dot(w3_ref[...], h, preferred_element_type=jnp.float32)
                    + b3_ref[...], 0.0)                                        # (32, tb)
    o_ref[...] = (jnp.dot(w4_ref[...], h, preferred_element_type=jnp.float32)
                  + b4_ref[...])                                               # (1, tb)


def run_mlp(x_t, w1f, w2t, b2, w3t, b3, w4t, b4, *, tb_max=1024):
    """x_t: (d_small+1, B) f32 feature-major slab (last row = stop id as float).
    Weights are (out, in); biases are (out, 1).  Returns (B, 1) f32."""
    dC, B = x_t.shape
    d_small = dC - 1
    H1, K1 = w1f.shape
    H2, H3, Do = w2t.shape[0], w3t.shape[0], w4t.shape[0]

    num_tc = _num_tensorcores()
    tb = _pick_batch_tile(B, num_tc, tb_max)
    Bp = _ceil_to(B, tb)
    if Bp // tb == 1:
        # Single tile: a full-extent block is always legal; avoid padding all the
        # way to a 128-multiple for tiny batches.
        Bp = _ceil_to(B, 8)
        tb = Bp
    if Bp != B:
        x_t = jnp.pad(x_t, ((0, 0), (0, Bp - B)))  # padded ids are 0.0 -> valid stop 0

    # Rough VMEM footprint (f32): resident weights + double-buffered streamed tiles
    # + activation temporaries.  Raise v5e's 16 MiB scoped default, keep headroom
    # well under v7x's 64 MiB physical VMEM.
    resident = 4 * (H1 * K1 + H2 * (H1 + 1) + H3 * (H2 + 1) + Do * (H3 + 1))
    streamed = 4 * tb * (dC + Do) * 2
    work = 4 * tb * (K1 + d_small + 2 * H1 + H2 + H3 + Do)
    vmem_limit = int(min(48 << 20, max(32 << 20, 2 * (resident + streamed + work))))

    def build(single_buffer_weights):
        def rep(shape):  # resident (constant-index) weight/table blocks
            kwargs = {}
            if single_buffer_weights:
                kwargs["pipeline_mode"] = pl.Buffered(1)
            return pl.BlockSpec(shape, lambda i: (0, 0), **kwargs)

        return pl.pallas_call(
            mlp_kernel,
            out_shape=jax.ShapeDtypeStruct((1, Bp), jnp.float32),
            grid_spec=pltpu.PrefetchScalarGridSpec(
                num_scalar_prefetch=0,
                grid=(Bp // tb,),
                in_specs=[
                    pl.BlockSpec((dC, tb), lambda i: (0, i)),   # streamed features + id
                    rep((H1, K1)),                              # fused, emb-folded fc1
                    rep((H2, H1)), rep((H2, 1)),                # fc2
                    rep((H3, H2)), rep((H3, 1)),                # fc3
                    rep((Do, H3)), rep((Do, 1)),                # fc4
                ],
                out_specs=pl.BlockSpec((1, tb), lambda i: (0, i)),   # lane-dense output
            ),
            compiler_params=pltpu.CompilerParams(
                dimension_semantics=("parallel",),
                vmem_limit_bytes=vmem_limit),
        )

    single_buffer = hasattr(pl, "Buffered")
    try:
        out = build(single_buffer)(x_t, w1f, w2t, b2, w3t, b3, w4t, b4)
    except Exception:
        if not single_buffer:
            raise
        out = build(False)(x_t, w1f, w2t, b2, w3t, b3, w4t, b4)

    return out[0, :B].reshape(B, 1)


# ---------------------------------------------------------------------------
# Model: deterministic PyTorch-style init + weight folding/fusing + glue.
# ---------------------------------------------------------------------------
class ArrivalTimeModelPallas:
    def __init__(self, num_routes, num_stops, stop_emb_dim=128, seed=0):
        self.num_routes = num_routes
        self.num_stops = num_stops
        self.stop_emb_dim = stop_emb_dim
        d_in = num_routes + stop_emb_dim + 4

        key = jax.random.PRNGKey(seed)
        keys = jax.random.split(key, 9)

        def linear_init(kw, kb, fan_in, fan_out):
            bound = 1.0 / jnp.sqrt(jnp.float32(fan_in))
            w = jax.random.uniform(kw, (fan_in, fan_out), jnp.float32, -bound, bound)
            b = jax.random.uniform(kb, (1, fan_out), jnp.float32, -bound, bound)
            return w, b

        # nn.Embedding default init ~ N(0, 1)
        self.emb = jax.random.normal(keys[0], (num_stops, stop_emb_dim), jnp.float32)
        self.w1, self.b1 = linear_init(keys[1], keys[2], d_in, 128)
        self.w2, self.b2 = linear_init(keys[3], keys[4], 128, 64)
        self.w3, self.b3 = linear_init(keys[5], keys[6], 64, 32)
        self.w4, self.b4 = linear_init(keys[7], keys[8], 32, 1)

        # ---- fold the embedding slice of fc1 (+ b1) and fuse fc1 into ONE matmul.
        # fc1 input layout: [routes (num_routes) | embedding (emb_dim) | day/sched/prev (4)]
        r, e = num_routes, stop_emb_dim
        w1_small = jnp.concatenate([self.w1[:r, :], self.w1[r + e:, :]], axis=0)   # (d_small, 128)
        emb_fc1_b = self.emb @ self.w1[r:r + e, :] + self.b1                       # (num_stops, 128)
        # Fused, transposed fc1 weight: columns = [small features | stop one-hot].
        self.w1f = jnp.concatenate([w1_small.T, emb_fc1_b.T], axis=1)              # (128, d_small+ns)

        # Transposed (out, in) weights and (out, 1) biases for the feature-major kernel.
        self.w2t, self.b2c = self.w2.T, self.b2.reshape(-1, 1)
        self.w3t, self.b3c = self.w3.T, self.b3.reshape(-1, 1)
        self.w4t, self.b4c = self.w4.T, self.b4.reshape(-1, 1)

    def __call__(self, route_ids, stop_ids, day_features, scheduled_time,
                 prev_arrival_time):
        B = stop_ids.shape[0]
        # stop ids ride along as one extra float row (exact for ids < 2**24).
        sid_f = stop_ids.reshape(B, 1).astype(jnp.float32)
        feats = jnp.concatenate(
            [route_ids.astype(jnp.float32),
             day_features.astype(jnp.float32),
             scheduled_time.astype(jnp.float32),
             prev_arrival_time.astype(jnp.float32),
             sid_f], axis=1)                                    # (B, d_small + 1)
        return run_mlp(feats.T, self.w1f, self.w2t, self.b2c,
                       self.w3t, self.b3c, self.w4t, self.b4c)  # (B, 1)

    # pure-JAX reference (unfolded weights) for correctness checking
    def reference(self, route_ids, stop_ids, day_features, scheduled_time,
                  prev_arrival_time):
        B = stop_ids.shape[0]
        stop_embedded = self.emb[stop_ids].reshape(B, -1)
        x = jnp.concatenate(
            [route_ids, stop_embedded, day_features, scheduled_time,
             prev_arrival_time], axis=1).astype(jnp.float32)
        h = jnp.maximum(x @ self.w1 + self.b1, 0.0)
        h = jnp.maximum(h @ self.w2 + self.b2, 0.0)
        h = jnp.maximum(h @ self.w3 + self.b3, 0.0)
        return h @ self.w4 + self.b4


# ---------------------------------------------------------------------------
if __name__ == "__main__":
    B = 256
    num_routes = 4
    num_stops = 16
    stop_emb_dim = 128

    model = ArrivalTimeModelPallas(num_routes, num_stops, stop_emb_dim, seed=0)

    key = jax.random.PRNGKey(0)
    k1, k2, k3, k4, k5 = jax.random.split(key, 5)
    route_ids = jax.nn.one_hot(
        jax.random.randint(k1, (B,), 0, num_routes), num_routes, dtype=jnp.float32)
    stop_ids = jax.random.randint(k2, (B,), 0, num_stops)
    day_features = jax.random.normal(k3, (B, 2), jnp.float32)
    scheduled_time = jax.random.uniform(k4, (B, 1), jnp.float32)
    prev_arrival_time = jax.random.uniform(k5, (B, 1), jnp.float32)

    out = model(route_ids, stop_ids, day_features, scheduled_time, prev_arrival_time)
    out = jax.block_until_ready(out)

    ref = model.reference(route_ids, stop_ids, day_features, scheduled_time,
                          prev_arrival_time)
    assert out.shape == (B, 1), out.shape
    assert jnp.allclose(out, ref, atol=2e-4, rtol=2e-4), float(
        jnp.max(jnp.abs(out - ref)))
    print("KERNEL_OK")
</pallas_src>

<mosaic_0001>
module attributes {stable_mosaic.version = 11 : i64} {
  func.func @mlp_kernel(%arg0: i32, %arg1: memref<9x256xf32, #tpu.memory_space<vmem>>, %arg2: memref<128x24xf32, #tpu.memory_space<vmem>>, %arg3: memref<64x128xf32, #tpu.memory_space<vmem>>, %arg4: memref<64x1xf32, #tpu.memory_space<vmem>>, %arg5: memref<32x64xf32, #tpu.memory_space<vmem>>, %arg6: memref<32x1xf32, #tpu.memory_space<vmem>>, %arg7: memref<1x32xf32, #tpu.memory_space<vmem>>, %arg8: memref<1x1xf32, #tpu.memory_space<vmem>>, %arg9: memref<1x256xf32, #tpu.memory_space<vmem>>) attributes {dimension_semantics = [#tpu.dimension_semantics<parallel>], iteration_bounds = array<i64: 1>, scalar_prefetch = 0 : i64, scratch_operands = 0 : i64, tpu.core_type = #tpu.core_type<tc>, window_params = [{transform_indices = @transform_0, window_bounds = array<i64: 9, 256>}, {pipeline_mode = #tpu.pipeline_mode<synchronous>, transform_indices = @transform_1, window_bounds = array<i64: 128, 24>}, {pipeline_mode = #tpu.pipeline_mode<synchronous>, transform_indices = @transform_2, window_bounds = array<i64: 64, 128>}, {pipeline_mode = #tpu.pipeline_mode<synchronous>, transform_indices = @transform_3, window_bounds = array<i64: 64, 1>}, {pipeline_mode = #tpu.pipeline_mode<synchronous>, transform_indices = @transform_4, window_bounds = array<i64: 32, 64>}, {pipeline_mode = #tpu.pipeline_mode<synchronous>, transform_indices = @transform_5, window_bounds = array<i64: 32, 1>}, {pipeline_mode = #tpu.pipeline_mode<synchronous>, transform_indices = @transform_6, window_bounds = array<i64: 1, 32>}, {pipeline_mode = #tpu.pipeline_mode<synchronous>, transform_indices = @transform_7, window_bounds = array<i64: 1, 1>}, {transform_indices = @transform_8, window_bounds = array<i64: 1, 256>}]} {
    %c0 = arith.constant 0 : index
    %c0_0 = arith.constant 0 : index
    %0 = vector.load %arg1[%c0, %c0_0] : memref<9x256xf32, #tpu.memory_space<vmem>>, vector<8x256xf32>
    %c8 = arith.constant 8 : index
    %c0_1 = arith.constant 0 : index
    %1 = vector.load %arg1[%c8, %c0_1] : memref<9x256xf32, #tpu.memory_space<vmem>>, vector<1x256xf32>
    %2 = arith.fptosi %1 : vector<1x256xf32> to vector<1x256xi32>
    %3 = tpu.iota {dimensions = array<i32: 0>} : vector<16x256xi32>
    %4 = vector.broadcast %2 : vector<1x256xi32> to vector<16x256xi32>
    %5 = arith.cmpi eq, %3, %4 : vector<16x256xi32>
    %6 = arith.extui %5 : vector<16x256xi1> to vector<16x256xi32>
    %7 = arith.sitofp %6 : vector<16x256xi32> to vector<16x256xf32>
    %8 = tpu.concatenate %0, %7 in 0 : vector<8x256xf32>, vector<16x256xf32> -> vector<24x256xf32>
    %c0_2 = arith.constant 0 : index
    %c0_3 = arith.constant 0 : index
    %9 = vector.load %arg2[%c0_2, %c0_3] : memref<128x24xf32, #tpu.memory_space<vmem>>, vector<128x24xf32>
    %cst = arith.constant dense<0.000000e+00> : vector<128x256xf32>
    %10 = tpu.matmul %9, %8, %cst {dimension_numbers = #tpu.dot_dimension_numbers<[1], [0], [0], [1], [0, 0, 1, 1], [], []>} : vector<128x24xf32>, vector<24x256xf32>, vector<128x256xf32> -> vector<128x256xf32>
    %cst_4 = arith.constant 0.000000e+00 : f32
    %11 = vector.broadcast %cst_4 : f32 to vector<128x256xf32>
    %12 = arith.maximumf %10, %11 : vector<128x256xf32>
    %c0_5 = arith.constant 0 : index
    %c0_6 = arith.constant 0 : index
    %13 = vector.load %arg3[%c0_5, %c0_6] : memref<64x128xf32, #tpu.memory_space<vmem>>, vector<64x128xf32>
    %cst_7 = arith.constant dense<0.000000e+00> : vector<64x256xf32>
    %14 = tpu.matmul %13, %12, %cst_7 {dimension_numbers = #tpu.dot_dimension_numbers<[1], [0], [0], [1], [0, 0, 1, 1], [], []>} : vector<64x128xf32>, vector<128x256xf32>, vector<64x256xf32> -> vector<64x256xf32>
    %c0_8 = arith.constant 0 : index
    %c0_9 = arith.constant 0 : index
    %15 = vector.load %arg4[%c0_8, %c0_9] : memref<64x1xf32, #tpu.memory_space<vmem>>, vector<64x1xf32>
    %16 = vector.broadcast %15 : vector<64x1xf32> to vector<64x256xf32>
    %17 = arith.addf %14, %16 : vector<64x256xf32>
    %cst_10 = arith.constant 0.000000e+00 : f32
    %18 = vector.broadcast %cst_10 : f32 to vector<64x256xf32>
    %19 = arith.maximumf %17, %18 : vector<64x256xf32>
    %c0_11 = arith.constant 0 : index
    %c0_12 = arith.constant 0 : index
    %20 = vector.load %arg5[%c0_11, %c0_12] : memref<32x64xf32, #tpu.memory_space<vmem>>, vector<32x64xf32>
    %cst_13 = arith.constant dense<0.000000e+00> : vector<32x256xf32>
    %21 = tpu.matmul %20, %19, %cst_13 {dimension_numbers = #tpu.dot_dimension_numbers<[1], [0], [0], [1], [0, 0, 1, 1], [], []>} : vector<32x64xf32>, vector<64x256xf32>, vector<32x256xf32> -> vector<32x256xf32>
    %c0_14 = arith.constant 0 : index
    %c0_15 = arith.constant 0 : index
    %22 = vector.load %arg6[%c0_14, %c0_15] : memref<32x1xf32, #tpu.memory_space<vmem>>, vector<32x1xf32>
    %23 = vector.broadcast %22 : vector<32x1xf32> to vector<32x256xf32>
    %24 = arith.addf %21, %23 : vector<32x256xf32>
    %cst_16 = arith.constant 0.000000e+00 : f32
    %25 = vector.broadcast %cst_16 : f32 to vector<32x256xf32>
    %26 = arith.maximumf %24, %25 : vector<32x256xf32>
    %c0_17 = arith.constant 0 : index
    %c0_18 = arith.constant 0 : index
    %27 = vector.load %arg7[%c0_17, %c0_18] : memref<1x32xf32, #tpu.memory_space<vmem>>, vector<1x32xf32>
    %cst_19 = arith.constant dense<0.000000e+00> : vector<1x256xf32>
    %28 = tpu.matmul %27, %26, %cst_19 {dimension_numbers = #tpu.dot_dimension_numbers<[1], [0], [0], [1], [0, 0, 1, 1], [], []>} : vector<1x32xf32>, vector<32x256xf32>, vector<1x256xf32> -> vector<1x256xf32>
    %c0_20 = arith.constant 0 : index
    %c0_21 = arith.constant 0 : index
    %29 = vector.load %arg8[%c0_20, %c0_21] : memref<1x1xf32, #tpu.memory_space<vmem>>, vector<1x1xf32>
    %30 = vector.broadcast %29 : vector<1x1xf32> to vector<1x256xf32>
    %31 = arith.addf %28, %30 : vector<1x256xf32>
    %c0_22 = arith.constant 0 : index
    %c0_23 = arith.constant 0 : index
    %32 = vector.load %arg9[%c0_22, %c0_23] : memref<1x256xf32, #tpu.memory_space<vmem>>, vector<1x256xf32>
    tpu.vector_store %arg9[%c0_22, %c0_23], %31 {strides = array<i32>} : memref<1x256xf32, #tpu.memory_space<vmem>>, vector<1x256xf32>,
    return
  }
  func.func @transform_0(%arg0: i32) -> (i32, i32) {
    %c0_i32 = arith.constant 0 : i32
    %c0_i32_0 = arith.constant 0 : i32
    return %c0_i32, %arg0 : i32, i32
  }
  func.func @transform_1(%arg0: i32) -> (i32, i32) {
    %c0_i32 = arith.constant 0 : i32
    %c0_i32_0 = arith.constant 0 : i32
    %c0_i32_1 = arith.constant 0 : i32
    return %c0_i32, %c0_i32_0 : i32, i32
  }
  func.func @transform_2(%arg0: i32) -> (i32, i32) {
    %c0_i32 = arith.constant 0 : i32
    %c0_i32_0 = arith.constant 0 : i32
    %c0_i32_1 = arith.constant 0 : i32
    return %c0_i32, %c0_i32_0 : i32, i32
  }
  func.func @transform_3(%arg0: i32) -> (i32, i32) {
    %c0_i32 = arith.constant 0 : i32
    %c0_i32_0 = arith.constant 0 : i32
    %c0_i32_1 = arith.constant 0 : i32
    return %c0_i32, %c0_i32_0 : i32, i32
  }
  func.func @transform_4(%arg0: i32) -> (i32, i32) {
    %c0_i32 = arith.constant 0 : i32
    %c0_i32_0 = arith.constant 0 : i32
    %c0_i32_1 = arith.constant 0 : i32
    return %c0_i32, %c0_i32_0 : i32, i32
  }
  func.func @transform_5(%arg0: i32) -> (i32, i32) {
    %c0_i32 = arith.constant 0 : i32
    %c0_i32_0 = arith.constant 0 : i32
    %c0_i32_1 = arith.constant 0 : i32
    return %c0_i32, %c0_i32_0 : i32, i32
  }
  func.func @transform_6(%arg0: i32) -> (i32, i32) {
    %c0_i32 = arith.constant 0 : i32
    %c0_i32_0 = arith.constant 0 : i32
    %c0_i32_1 = arith.constant 0 : i32
    return %c0_i32, %c0_i32_0 : i32, i32
  }
  func.func @transform_7(%arg0: i32) -> (i32, i32) {
    %c0_i32 = arith.constant 0 : i32
    %c0_i32_0 = arith.constant 0 : i32
    %c0_i32_1 = arith.constant 0 : i32
    return %c0_i32, %c0_i32_0 : i32, i32
  }
  func.func @transform_8(%arg0: i32) -> (i32, i32) {
    %c0_i32 = arith.constant 0 : i32
    %c0_i32_0 = arith.constant 0 : i32
    return %c0_i32, %arg0 : i32, i32
  }
}

module attributes {stable_mosaic.version = 11 : i64} {
  func.func @mlp_kernel(%arg0: i32, %arg1: memref<9x256xf32, #tpu.memory_space<vmem>>, %arg2: memref<128x24xf32, #tpu.memory_space<vmem>>, %arg3: memref<64x128xf32, #tpu.memory_space<vmem>>, %arg4: memref<64x1xf32, #tpu.memory_space<vmem>>, %arg5: memref<32x64xf32, #tpu.memory_space<vmem>>, %arg6: memref<32x1xf32, #tpu.memory_space<vmem>>, %arg7: memref<1x32xf32, #tpu.memory_space<vmem>>, %arg8: memref<1x1xf32, #tpu.memory_space<vmem>>, %arg9: memref<1x256xf32, #tpu.memory_space<vmem>>) attributes {dimension_semantics = [#tpu.dimension_semantics<parallel>], iteration_bounds = array<i64: 1>, scalar_prefetch = 0 : i64, scratch_operands = 0 : i64, tpu.core_type = #tpu.core_type<tc>, window_params = [{transform_indices = @transform_0, window_bounds = array<i64: 9, 256>}, {pipeline_mode = #tpu.pipeline_mode<synchronous>, transform_indices = @transform_1, window_bounds = array<i64: 128, 24>}, {pipeline_mode = #tpu.pipeline_mode<synchronous>, transform_indices = @transform_2, window_bounds = array<i64: 64, 128>}, {pipeline_mode = #tpu.pipeline_mode<synchronous>, transform_indices = @transform_3, window_bounds = array<i64: 64, 1>}, {pipeline_mode = #tpu.pipeline_mode<synchronous>, transform_indices = @transform_4, window_bounds = array<i64: 32, 64>}, {pipeline_mode = #tpu.pipeline_mode<synchronous>, transform_indices = @transform_5, window_bounds = array<i64: 32, 1>}, {pipeline_mode = #tpu.pipeline_mode<synchronous>, transform_indices = @transform_6, window_bounds = array<i64: 1, 32>}, {pipeline_mode = #tpu.pipeline_mode<synchronous>, transform_indices = @transform_7, window_bounds = array<i64: 1, 1>}, {transform_indices = @transform_8, window_bounds = array<i64: 1, 256>}]} {
    %c0 = arith.constant 0 : index
    %c0_0 = arith.constant 0 : index
    %0 = vector.load %arg1[%c0, %c0_0] : memref<9x256xf32, #tpu.memory_space<vmem>>, vector<8x256xf32>
    %c8 = arith.constant 8 : index
    %c0_1 = arith.constant 0 : index
    %1 = vector.load %arg1[%c8, %c0_1] : memref<9x256xf32, #tpu.memory_space<vmem>>, vector<1x256xf32>
    %2 = arith.fptosi %1 : vector<1x256xf32> to vector<1x256xi32>
    %3 = tpu.iota {dimensions = array<i32: 0>} : vector<16x256xi32>
    %4 = vector.broadcast %2 : vector<1x256xi32> to vector<16x256xi32>
    %5 = arith.cmpi eq, %3, %4 : vector<16x256xi32>
    %6 = arith.extui %5 : vector<16x256xi1> to vector<16x256xi32>
    %7 = arith.sitofp %6 : vector<16x256xi32> to vector<16x256xf32>
    %8 = tpu.concatenate %0, %7 in 0 : vector<8x256xf32>, vector<16x256xf32> -> vector<24x256xf32>
    %c0_2 = arith.constant 0 : index
    %c0_3 = arith.constant 0 : index
    %9 = vector.load %arg2[%c0_2, %c0_3] : memref<128x24xf32, #tpu.memory_space<vmem>>, vector<128x24xf32>
    %cst = arith.constant dense<0.000000e+00> : vector<128x256xf32>
    %10 = tpu.matmul %9, %8, %cst {dimension_numbers = #tpu.dot_dimension_numbers<[1], [0], [0], [1], [0, 0, 1, 1], [], []>} : vector<128x24xf32>, vector<24x256xf32>, vector<128x256xf32> -> vector<128x256xf32>
    %cst_4 = arith.constant 0.000000e+00 : f32
    %11 = vector.broadcast %cst_4 : f32 to vector<128x256xf32>
    %12 = arith.maximumf %10, %11 : vector<128x256xf32>
    %c0_5 = arith.constant 0 : index
    %c0_6 = arith.constant 0 : index
    %13 = vector.load %arg3[%c0_5, %c0_6] : memref<64x128xf32, #tpu.memory_space<vmem>>, vector<64x128xf32>
    %cst_7 = arith.constant dense<0.000000e+00> : vector<64x256xf32>
    %14 = tpu.matmul %13, %12, %cst_7 {dimension_numbers = #tpu.dot_dimension_numbers<[1], [0], [0], [1], [0, 0, 1, 1], [], []>} : vector<64x128xf32>, vector<128x256xf32>, vector<64x256xf32> -> vector<64x256xf32>
    %c0_8 = arith.constant 0 : index
    %c0_9 = arith.constant 0 : index
    %15 = vector.load %arg4[%c0_8, %c0_9] : memref<64x1xf32, #tpu.memory_space<vmem>>, vector<64x1xf32>
    %16 = vector.broadcast %15 : vector<64x1xf32> to vector<64x256xf32>
    %17 = arith.addf %14, %16 : vector<64x256xf32>
    %cst_10 = arith.constant 0.000000e+00 : f32
    %18 = vector.broadcast %cst_10 : f32 to vector<64x256xf32>
    %19 = arith.maximumf %17, %18 : vector<64x256xf32>
    %c0_11 = arith.constant 0 : index
    %c0_12 = arith.constant 0 : index
    %20 = vector.load %arg5[%c0_11, %c0_12] : memref<32x64xf32, #tpu.memory_space<vmem>>, vector<32x64xf32>
    %cst_13 = arith.constant dense<0.000000e+00> : vector<32x256xf32>
    %21 = tpu.matmul %20, %19, %cst_13 {dimension_numbers = #tpu.dot_dimension_numbers<[1], [0], [0], [1], [0, 0, 1, 1], [], []>} : vector<32x64xf32>, vector<64x256xf32>, vector<32x256xf32> -> vector<32x256xf32>
    %c0_14 = arith.constant 0 : index
    %c0_15 = arith.constant 0 : index
    %22 = vector.load %arg6[%c0_14, %c0_15] : memref<32x1xf32, #tpu.memory_space<vmem>>, vector<32x1xf32>
    %23 = vector.broadcast %22 : vector<32x1xf32> to vector<32x256xf32>
    %24 = arith.addf %21, %23 : vector<32x256xf32>
    %cst_16 = arith.constant 0.000000e+00 : f32
    %25 = vector.broadcast %cst_16 : f32 to vector<32x256xf32>
    %26 = arith.maximumf %24, %25 : vector<32x256xf32>
    %c0_17 = arith.constant 0 : index
    %c0_18 = arith.constant 0 : index
    %27 = vector.load %arg7[%c0_17, %c0_18] : memref<1x32xf32, #tpu.memory_space<vmem>>, vector<1x32xf32>
    %cst_19 = arith.constant dense<0.000000e+00> : vector<1x256xf32>
    %28 = tpu.matmul %27, %26, %cst_19 {dimension_numbers = #tpu.dot_dimension_numbers<[1], [0], [0], [1], [0, 0, 1, 1], [], []>} : vector<1x32xf32>, vector<32x256xf32>, vector<1x256xf32> -> vector<1x256xf32>
    %c0_20 = arith.constant 0 : index
    %c0_21 = arith.constant 0 : index
    %29 = vector.load %arg8[%c0_20, %c0_21] : memref<1x1xf32, #tpu.memory_space<vmem>>, vector<1x1xf32>
    %30 = vector.broadcast %29 : vector<1x1xf32> to vector<1x256xf32>
    %31 = arith.addf %28, %30 : vector<1x256xf32>
    %c0_22 = arith.constant 0 : index
    %c0_23 = arith.constant 0 : index
    %32 = vector.load %arg9[%c0_22, %c0_23] : memref<1x256xf32, #tpu.memory_space<vmem>>, vector<1x256xf32>
    tpu.vector_store %arg9[%c0_22, %c0_23], %31 {strides = array<i32>} : memref<1x256xf32, #tpu.memory_space<vmem>>, vector<1x256xf32>,
    return
  }
  func.func @transform_0(%arg0: i32) -> (i32, i32) {
    %c0_i32 = arith.constant 0 : i32
    %c0_i32_0 = arith.constant 0 : i32
    return %c0_i32, %arg0 : i32, i32
  }
  func.func @transform_1(%arg0: i32) -> (i32, i32) {
    %c0_i32 = arith.constant 0 : i32
    %c0_i32_0 = arith.constant 0 : i32
    %c0_i32_1 = arith.constant 0 : i32
    return %c0_i32, %c0_i32_0 : i32, i32
  }
  func.func @transform_2(%arg0: i32) -> (i32, i32) {
    %c0_i32 = arith.constant 0 : i32
    %c0_i32_0 = arith.constant 0 : i32
    %c0_i32_1 = arith.constant 0 : i32
    return %c0_i32, %c0_i32_0 : i32, i32
  }
  func.func @transform_3(%arg0: i32) -> (i32, i32) {
    %c0_i32 = arith.constant 0 : i32
    %c0_i32_0 = arith.constant 0 : i32
    %c0_i32_1 = arith.constant 0 : i32
    return %c0_i32, %c0_i32_0 : i32, i32
  }
  func.func @transform_4(%arg0: i32) -> (i32, i32) {
    %c0_i32 = arith.constant 0 : i32
    %c0_i32_0 = arith.constant 0 : i32
    %c0_i32_1 = arith.constant 0 : i32
    return %c0_i32, %c0_i32_0 : i32, i32
  }
  func.func @transform_5(%arg0: i32) -> (i32, i32) {
    %c0_i32 = arith.constant 0 : i32
    %c0_i32_0 = arith.constant 0 : i32
    %c0_i32_1 = arith.constant 0 : i32
    return %c0_i32, %c0_i32_0 : i32, i32
  }
  func.func @transform_6(%arg0: i32) -> (i32, i32) {
    %c0_i32 = arith.constant 0 : i32
    %c0_i32_0 = arith.constant 0 : i32
    %c0_i32_1 = arith.constant 0 : i32
    return %c0_i32, %c0_i32_0 : i32, i32
  }
  func.func @transform_7(%arg0: i32) -> (i32, i32) {
    %c0_i32 = arith.constant 0 : i32
    %c0_i32_0 = arith.constant 0 : i32
    %c0_i32_1 = arith.constant 0 : i32
    return %c0_i32, %c0_i32_0 : i32, i32
  }
  func.func @transform_8(%arg0: i32) -> (i32, i32) {
    %c0_i32 = arith.constant 0 : i32
    %c0_i32_0 = arith.constant 0 : i32
    return %c0_i32, %arg0 : i32, i32
  }
}

</mosaic_0001>

<bundles_post_ra>
// kernel: tpu_custom_call.1
= control target key start
LH: loop header
LB: loop body
LE: loop exit
PB: predicated region body
PF: predicated region fallthrough
CT: control target
= control target key end

     0   :  { %s1108_s0 = inlined_call_operand.vmem [shape: f32[9,256], index: 0, kind: input, shape index: {}]   ;;  %s1109_s1 = inlined_call_operand.vmem [shape: f32[128,24], index: 1, kind: input, shape index: {}]   ;;  %s1110_s2 = inlined_call_operand.vmem [shape: f32[64,128], index: 2, kind: input, shape index: {}]   ;;  %s1111_s3 = inlined_call_operand.vmem [shape: f32[64,1], index: 3, kind: input, shape index: {}]   ;;  %s1112_s4 = inlined_call_operand.vmem [shape: f32[32,64], index: 4, kind: input, shape index: {}]   ;;  %s1113_s5 = inlined_call_operand.vmem [shape: f32[32,1], index: 5, kind: input, shape index: {}]   ;;  %s1114_s6 = inlined_call_operand.vmem [shape: f32[1,32], index: 6, kind: input, shape index: {}]   ;;  %s1115_s7 = inlined_call_operand.<no memory space> [shape: f32[1,1], index: 7, kind: input, shape index: {}]   ;;  %s1116_s8 = inlined_call_operand.hbm [shape: f32[1,256], index: 8, kind: output, shape index: {}]  }
   0x1   :  { %v13_v0 = vstv %s1115_s7 }
   0x2   :  { %14 = vst [vmem:[#allocation2] sm:$0x1] %v13_v0 }
   0x3   :  { %v764_v1 = vld [vmem:[%s1108_s0 + $0x10] ss:$8 sm:$0x3]  ;;  %v37_v2 = vlaneseq  ;;  %v825_v5 = vmov 0.0  }
   0x4   :  { %v794_v3 = vtrunc.f32 %v764_v1  ;;  %189 = vmatprep.mubr.f32.mxu0 %v825_v5  ;;  %438 = vmatprep.mubr.f32.mxu1 %v825_v5 }
   0x5   :  { %v882_v4 = vshrl.u32 %v37_v2, 7 }
   0x6   :  { %v795_v6 = vcvt.f32.s32 %v794_v3 }
   0x7   :  { %v39_v7 = vadd.s32 8, %v882_v4  ;;  %v46_v8 = vsub.s32 1, %v882_v4  ;;  %v42_v9 = vsub.s32 0, %v882_v4 }
   0x9   :  { %v47_v10 = vrot.slane %v795_v6, %v46_v8  ;;  %v43_v11 = vrot.slane %v795_v6, %v42_v9 }
   0xa   :  { %15 = vsyncpa [#allocation4], 0  ;;  %v826_v12 = vmov 1.0   ;;  %v33_v13 = vld [vmem:[%s1108_s0 + $0x8] sm:$0xff]  ;;  %v32_v14 = vld [vmem:[%s1108_s0] sm:$0xff]  ;;  %vm76_vm4 = vcmask 195584  }
   0xb   :  { %vm51_vm0 = vcmp.eq.s32.totalorder %v39_v7, %v47_v10  ;;  %vm50_vm1 = vcmp.eq.s32.totalorder %v39_v7, %v43_v11  ;;  %vm49_vm2 = vcmp.eq.s32.totalorder %v882_v4, %v47_v10  ;;  %vm48_vm3 = vcmp.eq.s32.totalorder %v882_v4, %v43_v11  ;;  %v60_v15 = vld [vmem:[%s1109_s1] sm:$0xff]  ;;  %v61_v16 = vld [vmem:[%s1109_s1 + $0x8] sm:$0xff]  ;;  %v62_v17 = vld [vmem:[%s1109_s1 + $0x10] sm:$0xff]  ;;  %s829_s15 = smov [#allocation3]  }
   0xc   :  { %769 = vmatprep.subr.msk.mxu0 %vm51_vm0, %v826_v12  ;;  %v63_v18 = vld [vmem:[%s1109_s1 + $0x18] sm:$0xff]  ;;  %v64_v19 = vld [vmem:[%s1109_s1 + $0x20] sm:$0xff]  ;;  %v65_v20 = vld [vmem:[%s1109_s1 + $0x28] sm:$0xff]  ;;  %v827_v33 = vmov 0   ;;  %vm531_vm5 = vcmask 523264   ;;  %vm652_vm6 = vcmask 261120  }
   0xd   :  { %770 = vmatpush1.msk.msra.mxu0 %vm50_vm1, %v826_v12  ;;  %v66_v21 = vld [vmem:[%s1109_s1 + $0x30] sm:$0xff]  ;;  %v67_v22 = vld [vmem:[%s1109_s1 + $0x38] sm:$0xff]  ;;  %v68_v23 = vld [vmem:[%s1109_s1 + $0x40] sm:$0xff]  ;;  %802 = vset.pattern.permute.xlu1 %v827_v33  ;;  %vm747_vm7 = vcmp.lt.s32.totalorder %v37_v2, 256 }
   0xe   :  { %771 = vmatprep.subr.msk.mxu0 %vm49_vm2, %v826_v12  ;;  %v69_v24 = vld [vmem:[%s1109_s1 + $0x48] sm:$0xff]  ;;  %v70_v25 = vld [vmem:[%s1109_s1 + $0x50] sm:$0xff]  ;;  %v71_v26 = vld [vmem:[%s1109_s1 + $0x58] sm:$0xff]  ;;  %801 = vset.pattern.permute.xlu0 %v827_v33 }
   0xf   :  { %772 = vmatpush1.msk.msra.mxu0 %vm48_vm3, %v826_v12  ;;  %v72_v27 = vld [vmem:[%s1109_s1 + $0x60] sm:$0xff]  ;;  %v73_v28 = vld [vmem:[%s1109_s1 + $0x68] sm:$0xff]  ;;  %v74_v29 = vld [vmem:[%s1109_s1 + $0x70] sm:$0xff] }
  0x10   :  { %155 = vmatprep.subr.mxu0 %v33_v13  ;;  %v75_v30 = vld [vmem:[%s1109_s1 + $0x78] sm:$0xff]  ;;  %v331_v31 = vld [vmem:[%s1111_s3 + $0x28] sm:$0xff]  ;;  %v330_v35 = vld [vmem:[%s1111_s3 + $0x20] sm:$0xff] }
  0x11   :  { %156 = vmatpush1.msra.mxu0 %v32_v14  ;;  %v333_v32 = vld [vmem:[%s1111_s3 + $0x38] sm:$0xff]  ;;  %361 = vperm.xlu1 %802, %v331_v31   ;;  %v332_v36 = vld [vmem:[%s1111_s3 + $0x30] sm:$0xff]  ;;  %v326_v43 = vld [vmem:[%s1111_s3] sm:$0xff] }
  0x12   :  { %773 = vmatmul.mubr.msk.f32.vlgmr.msra.gmra.mxu0 %vm76_vm4, %v60_v15  ;;  %371 = vperm.xlu0 %801, %v333_v32   ;;  %v328_v39 = vld [vmem:[%s1111_s3 + $0x10] sm:$0xff]  ;;  %v329_v40 = vld [vmem:[%s1111_s3 + $0x18] sm:$0xff]  ;;  %v327_v44 = vld [vmem:[%s1111_s3 + $0x8] sm:$0xff] }
  0x13   :  { %195 = vmatprep.mubr.f32.mxu0 %v825_v5  ;;  %v510_v47 = vld [vmem:[%s1113_s5 + $0x18] sm:$0xff]  ;;  %v509_v48 = vld [vmem:[%s1113_s5 + $0x10] sm:$0xff]  ;;  %v508_v51 = vld [vmem:[%s1113_s5 + $0x8] sm:$0xff] }
  0x14   :  { %v507_v52 = vld [vmem:[%s1113_s5] sm:$0xff] }
  0x15   :  { %356 = vperm.xlu1 %802, %v330_v35   ;;  %v642_v55 = vld [vmem:[#allocation2] sm:$0x1] }
  0x16   :  { %774 = vmatmul.mubr.msk.f32.gmra.mxu0 %vm76_vm4, %v61_v16  ;;  %366 = vperm.xlu0 %801, %v332_v36  }
  0x17   :  { %201 = vmatprep.mubr.f32.mxu0 %v825_v5 }
  0x19   :  { %346 = vperm.xlu1 %802, %v328_v39  }
  0x1a   :  { %775 = vmatmul.mubr.msk.f32.gmra.mxu0 %vm76_vm4, %v62_v17  ;;  %351 = vperm.xlu0 %801, %v329_v40  }
  0x1b   :  { %207 = vmatprep.mubr.f32.mxu0 %v825_v5 }
  0x1d   :  { %336 = vperm.xlu1 %802, %v326_v43  }
  0x1e   :  { %776 = vmatmul.mubr.msk.f32.gmra.mxu0 %vm76_vm4, %v63_v18  ;;  %341 = vperm.xlu0 %801, %v327_v44  }
  0x1f   :  { %213 = vmatprep.mubr.f32.mxu0 %v825_v5 }
  0x21   :  { %523 = vperm.xlu1 %802, %v509_v48  }
  0x22   :  { %777 = vmatmul.mubr.msk.f32.gmra.mxu0 %vm76_vm4, %v64_v19  ;;  %528 = vperm.xlu0 %801, %v510_v47  }
  0x23   :  { %219 = vmatprep.mubr.f32.mxu0 %v825_v5 }
  0x25   :  { %513 = vperm.xlu1 %802, %v507_v52  }
  0x26   :  { %778 = vmatmul.mubr.msk.f32.gmra.mxu0 %vm76_vm4, %v65_v20  ;;  %518 = vperm.xlu0 %801, %v508_v51  }
  0x27   :  { %225 = vmatprep.mubr.f32.mxu0 %v825_v5 }
  0x2a   :  { %779 = vmatmul.mubr.msk.f32.gmra.mxu0 %vm76_vm4, %v66_v21  ;;  %645 = vperm.xlu0 %801, %v642_v55  }
  0x2b   :  { %231 = vmatprep.mubr.f32.mxu0 %v825_v5 }
  0x2e   :  { %780 = vmatmul.mubr.msk.f32.gmra.mxu0 %vm76_vm4, %v67_v22 }
  0x2f   :  { %237 = vmatprep.mubr.f32.mxu0 %v825_v5 }
  0x32   :  { %781 = vmatmul.mubr.msk.f32.gmra.mxu0 %vm76_vm4, %v68_v23 }
  0x33   :  { %243 = vmatprep.mubr.f32.mxu0 %v825_v5 }
  0x36   :  { %782 = vmatmul.mubr.msk.f32.gmra.mxu0 %vm76_vm4, %v69_v24 }
  0x37   :  { %249 = vmatprep.mubr.f32.mxu0 %v825_v5 }
  0x3a   :  { %783 = vmatmul.mubr.msk.f32.gmra.mxu0 %vm76_vm4, %v70_v25 }
  0x3b   :  { %255 = vmatprep.mubr.f32.mxu0 %v825_v5 }
  0x3e   :  { %784 = vmatmul.mubr.msk.f32.gmra.mxu0 %vm76_vm4, %v71_v26 }
  0x3f   :  { %261 = vmatprep.mubr.f32.mxu0 %v825_v5 }
  0x42   :  { %785 = vmatmul.mubr.msk.f32.gmra.mxu0 %vm76_vm4, %v72_v27 }
  0x43   :  { %267 = vmatprep.mubr.f32.mxu0 %v825_v5 }
  0x46   :  { %786 = vmatmul.mubr.msk.f32.gmra.mxu0 %vm76_vm4, %v73_v28 }
  0x47   :  { %273 = vmatprep.mubr.f32.mxu0 %v825_v5 }
  0x4a   :  { %787 = vmatmul.mubr.msk.f32.gmra.mxu0 %vm76_vm4, %v74_v29 }
  0x4b   :  { %279 = vmatprep.mubr.f32.mxu0 %v825_v5 }
  0x4e   :  { %788 = vmatmul.mubr.msk.f32.gmra.mxu0 %vm76_vm4, %v75_v30 }
  0x4f   :  { %720 = vmatprep.mubr.f32.mxu0 %v825_v5 }
  0xd2   :  { %v985_v34 = vpop.f32.mrf.mxu0 }
  0xd4   :  { %v993_v37 = vpop.f32.mrf.mxu0 }
  0xd6   :  { %v995_v38 = vpop.f32.mrf.mxu0 }
  0xd8   :  { %v1003_v41 = vpop.f32.mrf.mxu0 }
  0xda   :  { %v1005_v42 = vpop.f32.mrf.mxu0 }
  0xdb   :  { %v290_v55 = vmax.f32 %v1005_v42, 0.0  ;;  %v323_v42 = vld [vmem:[%s1110_s2 + $0x28] sm:$0xff] }
  0xdc   :  { %v1013_v45 = vpop.f32.mrf.mxu0 }
  0xdd   :  { %v291_v52 = vmax.f32 %v1013_v45, 0.0  ;;  %v318_v45 = vld [vmem:[%s1110_s2] sm:$0xff] }
  0xde   :  { %v1015_v46 = vpop.f32.mrf.mxu0 }
  0xdf   :  { %v292_v51 = vmax.f32 %v1015_v46, 0.0  ;;  %v324_v46 = vld [vmem:[%s1110_s2 + $0x30] sm:$0xff] }
  0xe0   :  { %v1023_v49 = vpop.f32.mrf.mxu0 }
  0xe1   :  { %v293_v48 = vmax.f32 %v1023_v49, 0.0  ;;  %v286_v49 = vmax.f32 %v985_v34, 0.0  ;;  %v320_v34 = vld [vmem:[%s1110_s2 + $0x10] sm:$0xff] }
  0xe2   :  { %v1025_v50 = vpop.f32.mrf.mxu0 }
  0xe3   :  { %v294_v47 = vmax.f32 %v1025_v50, 0.0  ;;  %v287_v50 = vmax.f32 %v993_v37, 0.0  ;;  %v321_v37 = vld [vmem:[%s1110_s2 + $0x18] sm:$0xff] }
  0xe4   :  { %v1033_v53 = vpop.f32.mrf.mxu0 }
  0xe5   :  { %v295_v44 = vmax.f32 %v1033_v53, 0.0  ;;  %v288_v53 = vmax.f32 %v995_v38, 0.0  ;;  %v319_v38 = vld [vmem:[%s1110_s2 + $0x8] sm:$0xff] }
  0xe6   :  { %v1035_v54 = vpop.f32.mrf.mxu0 }
  0xe7   :  { %v296_v43 = vmax.f32 %v1035_v54, 0.0  ;;  %v289_v54 = vmax.f32 %v1003_v41, 0.0  ;;  %v322_v41 = vld [vmem:[%s1110_s2 + $0x20] sm:$0xff] }
  0xe8   :  { %v1037_v56 = vpop.f32.mrf.mxu0 }
  0xe9   :  { %v297_v40 = vmax.f32 %v1037_v56, 0.0  ;;  %v325_v56 = vld [vmem:[%s1110_s2 + $0x38] sm:$0xff] }
  0xea   :  { %v227_v57 = vpop.f32.mrf.mxu0 }
  0xeb   :  { %v298_v39 = vmax.f32 %v227_v57, 0.0 }
  0xec   :  { %v229_v58 = vpop.f32.mrf.mxu0 }
  0xed   :  { %v299_v36 = vmax.f32 %v229_v58, 0.0 }
  0xee   :  { %v233_v59 = vpop.f32.mrf.mxu0 }
  0xef   :  { %v300_v35 = vmax.f32 %v233_v59, 0.0 }
  0xf0   :  { %v235_v60 = vpop.f32.mrf.mxu0 }
  0xf1   :  { %v301_v33 = vmax.f32 %v235_v60, 0.0 }
  0xf2   :  { %v239_v61 = vpop.f32.mrf.mxu0 }
  0xf3   :  { %v302_v32 = vmax.f32 %v239_v61, 0.0 }
  0xf4   :  { %v241_v62 = vpop.f32.mrf.mxu0 }
  0xf5   :  { %v303_v31 = vmax.f32 %v241_v62, 0.0 }
  0xf6   :  { %v245_v63 = vpop.f32.mrf.mxu0 }
  0xf7   :  { %v304_v30 = vmax.f32 %v245_v63, 0.0 }
  0xf8   :  { %v247_v0 = vpop.f32.mrf.mxu0 }
  0xf9   :  { %v305_v29 = vmax.f32 %v247_v0, 0.0 }
  0xfa   :  { %v251_v1 = vpop.f32.mrf.mxu0 }
  0xfb   :  { %v306_v28 = vmax.f32 %v251_v1, 0.0 }
  0xfc   :  { %v253_v3 = vpop.f32.mrf.mxu0 }
  0xfd   :  { %v307_v27 = vmax.f32 %v253_v3, 0.0 }
  0xfe   :  { %v257_v6 = vpop.f32.mrf.mxu0 }
  0xff   :  { %v308_v26 = vmax.f32 %v257_v6, 0.0 }
 0x100   :  { %v259_v7 = vpop.f32.mrf.mxu0 }
 0x101   :  { %v309_v25 = vmax.f32 %v259_v7, 0.0  ;;  %v372_v7 = vpop.permute.xlu0 %371 }
 0x102   :  { %v263_v8 = vpop.f32.mrf.mxu0 }
 0x103   :  { %v310_v24 = vmax.f32 %v263_v8, 0.0 }
 0x104   :  { %v265_v10 = vpop.f32.mrf.mxu0 }
 0x105   :  { %v311_v23 = vmax.f32 %v265_v10, 0.0  ;;  %v362_v10 = vpop.permute.xlu1 %361 }
 0x106   :  { %v269_v11 = vpop.f32.mrf.mxu0 }
 0x107   :  { %v312_v22 = vmax.f32 %v269_v11, 0.0 }
 0x108   :  { %v271_v12 = vpop.f32.mrf.mxu0 }
 0x109   :  { %v313_v21 = vmax.f32 %v271_v12, 0.0 }
 0x10a   :  { %v275_v13 = vpop.f32.mrf.mxu0 }
 0x10b   :  { %v314_v20 = vmax.f32 %v275_v13, 0.0  ;;  %v367_v13 = vpop.permute.xlu0 %366 }
 0x10c   :  { %v277_v14 = vpop.f32.mrf.mxu0 }
 0x10d   :  { %v315_v19 = vmax.f32 %v277_v14, 0.0 }
 0x10e   :  { %v281_v15 = vpop.f32.mrf.mxu0 }
 0x10f   :  { %v316_v18 = vmax.f32 %v281_v15, 0.0  ;;  %v357_v15 = vpop.permute.xlu1 %356 }
 0x110   :  { %v283_v16 = vpop.f32.mrf.mxu0 }
 0x111   :  { %v317_v17 = vmax.f32 %v283_v16, 0.0 }
 0x113   :  { %374 = vmatprep.subr.mxu1 %v317_v17 }
 0x114   :  { %375 = vmatpush1.msra.mxu1 %v316_v18 }
 0x115   :  { %376 = vmatprep.subr.mxu1 %v315_v19 }
 0x116   :  { %377 = vmatpush1.msra.mxu1 %v314_v20 }
 0x117   :  { %378 = vmatprep.subr.mxu1 %v313_v21  ;;  %v352_v21 = vpop.permute.xlu0 %351 }
 0x118   :  { %379 = vmatpush1.msra.mxu1 %v312_v22 }
 0x119   :  { %380 = vmatprep.subr.mxu1 %v311_v23 }
 0x11a   :  { %381 = vmatpush1.msra.mxu1 %v310_v24 }
 0x11b   :  { %382 = vmatprep.subr.mxu1 %v309_v25 }
 0x11c   :  { %383 = vmatpush1.msra.mxu1 %v308_v26  ;;  %v347_v26 = vpop.permute.xlu1 %346 }
 0x11d   :  { %384 = vmatprep.subr.mxu1 %v307_v27 }
 0x11e   :  { %385 = vmatpush1.msra.mxu1 %v306_v28 }
 0x11f   :  { %386 = vmatprep.subr.mxu1 %v305_v29 }
 0x120   :  { %387 = vmatpush1.msra.mxu1 %v304_v30 }
 0x121   :  { %388 = vmatprep.subr.mxu1 %v303_v31 }
 0x122   :  { %389 = vmatpush1.msra.mxu1 %v302_v32 }
 0x123   :  { %390 = vmatprep.subr.mxu1 %v301_v33 }
 0x124   :  { %391 = vmatpush1.msra.mxu1 %v300_v35 }
 0x125   :  { %392 = vmatprep.subr.mxu1 %v299_v36  ;;  %v342_v36 = vpop.permute.xlu0 %341 }
 0x126   :  { %393 = vmatpush1.msra.mxu1 %v298_v39 }
 0x127   :  { %394 = vmatprep.subr.mxu1 %v297_v40 }
 0x128   :  { %395 = vmatpush1.msra.mxu1 %v296_v43 }
 0x129   :  { %396 = vmatprep.subr.mxu1 %v295_v44 }
 0x12a   :  { %397 = vmatpush1.msra.mxu1 %v294_v47  ;;  %v337_v47 = vpop.permute.xlu1 %336 }
 0x12b   :  { %398 = vmatprep.subr.mxu1 %v293_v48 }
 0x12c   :  { %399 = vmatpush1.msra.mxu1 %v292_v51 }
 0x12d   :  { %400 = vmatprep.subr.mxu1 %v291_v52 }
 0x12e   :  { %401 = vmatpush1.msra.mxu1 %v290_v55 }
 0x12f   :  { %402 = vmatprep.subr.mxu1 %v289_v54 }
 0x130   :  { %403 = vmatpush1.msra.mxu1 %v288_v53 }
 0x131   :  { %404 = vmatprep.subr.mxu1 %v287_v50 }
 0x132   :  { %405 = vmatpush1.msra.mxu1 %v286_v49 }
 0x133   :  { %439 = vmatmul.mubr.f32.vlgmr.msra.gmra.mxu1 %v318_v45 }
 0x134   :  { %444 = vmatprep.mubr.f32.mxu1 %v825_v5 }
 0x137   :  { %445 = vmatmul.mubr.f32.gmra.mxu1 %v319_v38 }
 0x138   :  { %450 = vmatprep.mubr.f32.mxu1 %v825_v5 }
 0x13b   :  { %451 = vmatmul.mubr.f32.gmra.mxu1 %v320_v34 }
 0x13c   :  { %456 = vmatprep.mubr.f32.mxu1 %v825_v5 }
 0x13f   :  { %457 = vmatmul.mubr.f32.gmra.mxu1 %v321_v37 }
 0x140   :  { %462 = vmatprep.mubr.f32.mxu1 %v825_v5 }
 0x143   :  { %463 = vmatmul.mubr.f32.gmra.mxu1 %v322_v41  ;;  %v503_v41 = vld [vmem:[%s1112_s4] sm:$0xff] }
 0x144   :  { %468 = vmatprep.mubr.f32.mxu1 %v825_v5 }
 0x147   :  { %469 = vmatmul.mubr.f32.gmra.mxu1 %v323_v42  ;;  %v504_v42 = vld [vmem:[%s1112_s4 + $0x8] sm:$0xff] }
 0x148   :  { %474 = vmatprep.mubr.f32.mxu1 %v825_v5 }
 0x14b   :  { %475 = vmatmul.mubr.f32.gmra.mxu1 %v324_v46  ;;  %v505_v46 = vld [vmem:[%s1112_s4 + $0x10] sm:$0xff] }
 0x14c   :  { %480 = vmatprep.mubr.f32.mxu1 %v825_v5 }
 0x14f   :  { %481 = vmatmul.mubr.f32.gmra.mxu1 %v325_v56  ;;  %v506_v56 = vld [vmem:[%s1112_s4 + $0x18] sm:$0xff] }
 0x150   :  { %608 = vmatprep.mubr.f32.mxu1 %v825_v5 }
 0x1f3   :  { %v440_v57 = vpop.f32.mrf.mxu1 }
 0x1f4   :  { %v441_v50 = vadd.f32 %v440_v57, %v337_v47 }
 0x1f5   :  { %v442_v58 = vpop.f32.mrf.mxu1 }
 0x1f6   :  { %v443_v54 = vadd.f32 %v442_v58, %v337_v47  ;;  %v487_v37 = vmax.f32 %v441_v50, 0.0 }
 0x1f7   :  { %v446_v59 = vpop.f32.mrf.mxu1 }
 0x1f8   :  { %v447_v52 = vadd.f32 %v446_v59, %v342_v36  ;;  %v488_v34 = vmax.f32 %v443_v54, 0.0 }
 0x1f9   :  { %v448_v60 = vpop.f32.mrf.mxu1 }
 0x1fa   :  { %v449_v48 = vadd.f32 %v448_v60, %v342_v36  ;;  %v489_v38 = vmax.f32 %v447_v52, 0.0 }
 0x1fb   :  { %v452_v61 = vpop.f32.mrf.mxu1 }
 0x1fc   :  { %v453_v43 = vadd.f32 %v452_v61, %v347_v26  ;;  %v490_v45 = vmax.f32 %v449_v48, 0.0 }
 0x1fd   :  { %v454_v62 = vpop.f32.mrf.mxu1 }
 0x1fe   :  { %v455_v39 = vadd.f32 %v454_v62, %v347_v26  ;;  %v491_v49 = vmax.f32 %v453_v43, 0.0  ;;  %v529_v62 = vpop.permute.xlu0 %528 }
 0x1ff   :  { %v458_v63 = vpop.f32.mrf.mxu1 }
 0x200   :  { %v459_v33 = vadd.f32 %v458_v63, %v352_v21  ;;  %v492_v53 = vmax.f32 %v455_v39, 0.0 }
 0x201   :  { %v460_v0 = vpop.f32.mrf.mxu1 }
 0x202   :  { %v461_v31 = vadd.f32 %v460_v0, %v352_v21  ;;  %v493_v55 = vmax.f32 %v459_v33, 0.0  ;;  %v524_v0 = vpop.permute.xlu1 %523 }
 0x203   :  { %v464_v1 = vpop.f32.mrf.mxu1 }
 0x204   :  { %v465_v29 = vadd.f32 %v464_v1, %v357_v15  ;;  %v494_v51 = vmax.f32 %v461_v31, 0.0 }
 0x205   :  { %v466_v3 = vpop.f32.mrf.mxu1 }
 0x206   :  { %v467_v27 = vadd.f32 %v466_v3, %v357_v15  ;;  %v495_v44 = vmax.f32 %v465_v29, 0.0 }
 0x207   :  { %v470_v6 = vpop.f32.mrf.mxu1 }
 0x208   :  { %v471_v24 = vadd.f32 %v470_v6, %v362_v10  ;;  %v496_v40 = vmax.f32 %v467_v27, 0.0 }
 0x209   :  { %v472_v8 = vpop.f32.mrf.mxu1 }
 0x20a   :  { %v473_v22 = vadd.f32 %v472_v8, %v362_v10  ;;  %v497_v35 = vmax.f32 %v471_v24, 0.0  ;;  %v519_v10 = vpop.permute.xlu0 %518  ;;  %v641_v24 = vld [vmem:[%s1114_s6] sm:$0x1]  ;;  %s756_s6 = sshll.u32 %s829_s15, 4  ;;  %s757_s6 = int_to_ptr.vmem [resolvable:$true] %s756_s6 }
 0x20b   :  { %v476_v11 = vpop.f32.mrf.mxu1  ;;  %s803_s0 = scalar_lea.vmem %s757_s6, 32  ;;  %p808_p1 = scmp.lt.s32.totalorder %s757_s6, %s757_s6 }
 0x20c   :  { %v477_v20 = vadd.f32 %v476_v11, %v367_v13  ;;  %v498_v32 = vmax.f32 %v473_v22, 0.0  ;;  %p804_p0 = scmp.ne.s32.totalorder %s757_s6, %s803_s0  ;;  %p809_p2 = scmp.lt.s32.totalorder %s803_s0, %s803_s0 }
 0x20d   :  { %v478_v12 = vpop.f32.mrf.mxu1 }
 0x20e   :  { %v479_v18 = vadd.f32 %v478_v12, %v367_v13  ;;  %v499_v30 = vmax.f32 %v477_v20, 0.0  ;;  %v514_v13 = vpop.permute.xlu1 %513  ;;  %v646_v27 = vpop.permute.xlu0 %645  ;;  %p810_p3 = por %p809_p2, %p808_p1 }
 0x20f   :  { %v482_v14 = vpop.f32.mrf.mxu1 }
 0x210   :  { %v483_v16 = vadd.f32 %v482_v14, %v372_v7  ;;  %v500_v28 = vmax.f32 %v479_v18, 0.0  ;;  %p811_p4 = pnand %p810_p3, %p804_p0 }
 0x211   :  { %v484_v17 = vpop.f32.mrf.mxu1 }
 0x212   :  { %v485_v19 = vadd.f32 %v484_v17, %v372_v7  ;;  %v501_v25 = vmax.f32 %v483_v16, 0.0 }
 0x214   :  { %v502_v23 = vmax.f32 %v485_v19, 0.0 }
 0x216   :  { %560 = vmatprep.subr.mxu1 %v502_v23 }
 0x217   :  { %561 = vmatpush1.msra.mxu1 %v501_v25  ;;  %v828_v25 = vmov 1966171168  }
 0x218   :  { %562 = vmatprep.subr.mxu1 %v500_v28  ;;  %v731_v26 = vunpack.c.l.s4 %v828_v25 }
 0x219   :  { %563 = vmatpush1.msra.mxu1 %v499_v30  ;;  %v651_v30 = vrot.slane %v646_v27, %v42_v9 }
 0x21a   :  { %564 = vmatprep.subr.mxu1 %v498_v32  ;;  %v732_v28 = vunpack.c.0.s8 %v731_v26 }
 0x21b   :  { %565 = vmatpush1.msra.mxu1 %v497_v35 }
 0x21c   :  { %566 = vmatprep.subr.mxu1 %v496_v40  ;;  %v735_v35 = vsub.s32 %v732_v28, %v882_v4 }
 0x21d   :  { %567 = vmatpush1.msra.mxu1 %v495_v44 }
 0x21e   :  { %568 = vmatprep.subr.mxu1 %v494_v51 }
 0x21f   :  { %569 = vmatpush1.msra.mxu1 %v493_v55 }
 0x220   :  { %570 = vmatprep.subr.mxu1 %v492_v53 }
 0x221   :  { %571 = vmatpush1.msra.mxu1 %v491_v49 }
 0x222   :  { %572 = vmatprep.subr.mxu1 %v490_v45 }
 0x223   :  { %573 = vmatpush1.msra.mxu1 %v489_v38 }
 0x224   :  { %574 = vmatprep.subr.mxu1 %v488_v34 }
 0x225   :  { %575 = vmatpush1.msra.mxu1 %v487_v37 }
 0x226   :  { %789 = vmatmul.mubr.msk.f32.vlgmr.msra.gmra.mxu1 %vm531_vm5, %v503_v41 }
 0x227   :  { %614 = vmatprep.mubr.f32.mxu1 %v825_v5 }
 0x22a   :  { %790 = vmatmul.mubr.msk.f32.gmra.mxu1 %vm531_vm5, %v504_v42 }
 0x22b   :  { %620 = vmatprep.mubr.f32.mxu1 %v825_v5 }
 0x22e   :  { %791 = vmatmul.mubr.msk.f32.gmra.mxu1 %vm531_vm5, %v505_v46 }
 0x22f   :  { %626 = vmatprep.mubr.f32.mxu1 %v825_v5 }
 0x232   :  { %792 = vmatmul.mubr.msk.f32.gmra.mxu1 %vm531_vm5, %v506_v56 }
 0x2e6   :  { %v610_v57 = vpop.f32.mrf.mxu1 }
 0x2e7   :  { %v611_v18 = vadd.f32 %v610_v57, %v514_v13 }
 0x2e8   :  { %v612_v58 = vpop.f32.mrf.mxu1 }
 0x2e9   :  { %v613_v16 = vadd.f32 %v612_v58, %v514_v13  ;;  %v633_v23 = vmax.f32 %v611_v18, 0.0 }
 0x2ea   :  { %v616_v59 = vpop.f32.mrf.mxu1 }
 0x2eb   :  { %v617_v14 = vadd.f32 %v616_v59, %v519_v10  ;;  %v634_v22 = vmax.f32 %v613_v16, 0.0 }
 0x2ec   :  { %v618_v60 = vpop.f32.mrf.mxu1 }
 0x2ed   :  { %v619_v11 = vadd.f32 %v618_v60, %v519_v10  ;;  %v635_v21 = vmax.f32 %v617_v14, 0.0 }
 0x2ee   :  { %v622_v61 = vpop.f32.mrf.mxu1 }
 0x2ef   :  { %v623_v5 = vadd.f32 %v622_v61, %v524_v0  ;;  %v636_v20 = vmax.f32 %v619_v11, 0.0 }
 0x2f0   :  { %v624_v63 = vpop.f32.mrf.mxu1 }
 0x2f1   :  { %v625_v7 = vadd.f32 %v624_v63, %v524_v0  ;;  %v637_v19 = vmax.f32 %v623_v5, 0.0 }
 0x2f2   :  { %v628_v1 = vpop.f32.mrf.mxu1 }
 0x2f3   :  { %v629_v3 = vadd.f32 %v628_v1, %v529_v62  ;;  %v638_v17 = vmax.f32 %v625_v7, 0.0 }
 0x2f4   :  { %v630_v6 = vpop.f32.mrf.mxu1 }
 0x2f5   :  { %v631_v8 = vadd.f32 %v630_v6, %v529_v62  ;;  %v639_v15 = vmax.f32 %v629_v3, 0.0 }
 0x2f7   :  { %v640_v12 = vmax.f32 %v631_v8, 0.0 }
 0x2f9   :  { %680 = vmatprep.subr.mxu0 %v640_v12 }
 0x2fa   :  { %681 = vmatpush1.msra.mxu0 %v639_v15 }
 0x2fb   :  { %682 = vmatprep.subr.mxu0 %v638_v17 }
 0x2fc   :  { %683 = vmatpush1.msra.mxu0 %v637_v19 }
 0x2fd   :  { %684 = vmatprep.subr.mxu0 %v636_v20 }
 0x2fe   :  { %685 = vmatpush1.msra.mxu0 %v635_v21 }
 0x2ff   :  { %686 = vmatprep.subr.mxu0 %v634_v22 }
 0x300   :  { %687 = vmatpush1.msra.mxu0 %v633_v23 }
 0x301   :  { %793 = vmatmul.mubr.msk.f32.vlgmr.msra.gmra.mxu0 %vm652_vm6, %v641_v24 }
 0x3c1   :  { %v722_v29 = vpop.f32.mrf.mxu0 }
 0x3c2   :  { %v723_v32 = vadd.f32 %v722_v29, %v651_v30 }
 0x3c3   :  { %v724_v31 = vpop.f32.mrf.mxu0 }
 0x3c4   :  { %v725_v33 = vadd.f32 %v724_v31, %v651_v30 }
 0x3c6   :  { %v729_v36 = vcombine.low %v723_v32, %v725_v33 }
 0x3c8   :  { %v736_v39 = vrot.slane %v729_v36, %v735_v35 }
 0x3ca   :  { %v743_v40 = vrot.slane %v736_v39, %v735_v35 }
 0x3cc   :  { %749 = vst.msk [vmem:[#allocation3] sm:$0x3] %vm747_vm7, %v743_v40 }
 0x3cd   :  { %814 = shalt.err (!%p811_p4)
}
 0x3ce   :  { %759 = dma.vmem_to_hbm [thread:$0]  %s757_s6, 32, %s1116_s8, [#allocation4]  }
 0x3cf   :  { %823 = dma.done.wait [#allocation4], 32  }
 0x3d0   :  { %824 = vsyncadd [#allocation4], 4294967264 }
 0x3d1   :  { %763 = vsyncpa [#allocation4], 1 }

// kernel: tpu_custom_call.1
= control target key start
LH: loop header
LB: loop body
LE: loop exit
PB: predicated region body
PF: predicated region fallthrough
CT: control target
= control target key end

     0   :  { %s1108_s0 = inlined_call_operand.vmem [shape: f32[9,256], index: 0, kind: input, shape index: {}]   ;;  %s1109_s1 = inlined_call_operand.vmem [shape: f32[128,24], index: 1, kind: input, shape index: {}]   ;;  %s1110_s2 = inlined_call_operand.vmem [shape: f32[64,128], index: 2, kind: input, shape index: {}]   ;;  %s1111_s3 = inlined_call_operand.vmem [shape: f32[64,1], index: 3, kind: input, shape index: {}]   ;;  %s1112_s4 = inlined_call_operand.vmem [shape: f32[32,64], index: 4, kind: input, shape index: {}]   ;;  %s1113_s5 = inlined_call_operand.vmem [shape: f32[32,1], index: 5, kind: input, shape index: {}]   ;;  %s1114_s6 = inlined_call_operand.vmem [shape: f32[1,32], index: 6, kind: input, shape index: {}]   ;;  %s1115_s7 = inlined_call_operand.<no memory space> [shape: f32[1,1], index: 7, kind: input, shape index: {}]   ;;  %s1116_s8 = inlined_call_operand.hbm [shape: f32[1,256], index: 8, kind: output, shape index: {}]  }
   0x1   :  { %v13_v0 = vstv %s1115_s7 }
   0x2   :  { %14 = vst [vmem:[#allocation2] sm:$0x1] %v13_v0 }
   0x3   :  { %v764_v1 = vld [vmem:[%s1108_s0 + $0x10] ss:$8 sm:$0x3]  ;;  %v37_v2 = vlaneseq  ;;  %v825_v5 = vmov 0.0  }
   0x4   :  { %v794_v3 = vtrunc.f32 %v764_v1  ;;  %189 = vmatprep.mubr.f32.mxu0 %v825_v5  ;;  %438 = vmatprep.mubr.f32.mxu1 %v825_v5 }
   0x5   :  { %v882_v4 = vshrl.u32 %v37_v2, 7 }
   0x6   :  { %v795_v6 = vcvt.f32.s32 %v794_v3 }
   0x7   :  { %v39_v7 = vadd.s32 8, %v882_v4  ;;  %v46_v8 = vsub.s32 1, %v882_v4  ;;  %v42_v9 = vsub.s32 0, %v882_v4 }
   0x9   :  { %v47_v10 = vrot.slane %v795_v6, %v46_v8  ;;  %v43_v11 = vrot.slane %v795_v6, %v42_v9 }
   0xa   :  { %15 = vsyncpa [#allocation4], 0  ;;  %v826_v12 = vmov 1.0   ;;  %v33_v13 = vld [vmem:[%s1108_s0 + $0x8] sm:$0xff]  ;;  %v32_v14 = vld [vmem:[%s1108_s0] sm:$0xff]  ;;  %vm76_vm4 = vcmask 195584  }
   0xb   :  { %vm51_vm0 = vcmp.eq.s32.totalorder %v39_v7, %v47_v10  ;;  %vm50_vm1 = vcmp.eq.s32.totalorder %v39_v7, %v43_v11  ;;  %vm49_vm2 = vcmp.eq.s32.totalorder %v882_v4, %v47_v10  ;;  %vm48_vm3 = vcmp.eq.s32.totalorder %v882_v4, %v43_v11  ;;  %v60_v15 = vld [vmem:[%s1109_s1] sm:$0xff]  ;;  %v61_v16 = vld [vmem:[%s1109_s1 + $0x8] sm:$0xff]  ;;  %v62_v17 = vld [vmem:[%s1109_s1 + $0x10] sm:$0xff]  ;;  %s829_s15 = smov [#allocation3]  }
   0xc   :  { %769 = vmatprep.subr.msk.mxu0 %vm51_vm0, %v826_v12  ;;  %v63_v18 = vld [vmem:[%s1109_s1 + $0x18] sm:$0xff]  ;;  %v64_v19 = vld [vmem:[%s1109_s1 + $0x20] sm:$0xff]  ;;  %v65_v20 = vld [vmem:[%s1109_s1 + $0x28] sm:$0xff]  ;;  %v827_v33 = vmov 0   ;;  %vm531_vm5 = vcmask 523264   ;;  %vm652_vm6 = vcmask 261120  }
   0xd   :  { %770 = vmatpush1.msk.msra.mxu0 %vm50_vm1, %v826_v12  ;;  %v66_v21 = vld [vmem:[%s1109_s1 + $0x30] sm:$0xff]  ;;  %v67_v22 = vld [vmem:[%s1109_s1 + $0x38] sm:$0xff]  ;;  %v68_v23 = vld [vmem:[%s1109_s1 + $0x40] sm:$0xff]  ;;  %802 = vset.pattern.permute.xlu1 %v827_v33  ;;  %vm747_vm7 = vcmp.lt.s32.totalorder %v37_v2, 256 }
   0xe   :  { %771 = vmatprep.subr.msk.mxu0 %vm49_vm2, %v826_v12  ;;  %v69_v24 = vld [vmem:[%s1109_s1 + $0x48] sm:$0xff]  ;;  %v70_v25 = vld [vmem:[%s1109_s1 + $0x50] sm:$0xff]  ;;  %v71_v26 = vld [vmem:[%s1109_s1 + $0x58] sm:$0xff]  ;;  %801 = vset.pattern.permute.xlu0 %v827_v33 }
   0xf   :  { %772 = vmatpush1.msk.msra.mxu0 %vm48_vm3, %v826_v12  ;;  %v72_v27 = vld [vmem:[%s1109_s1 + $0x60] sm:$0xff]  ;;  %v73_v28 = vld [vmem:[%s1109_s1 + $0x68] sm:$0xff]  ;;  %v74_v29 = vld [vmem:[%s1109_s1 + $0x70] sm:$0xff] }
  0x10   :  { %155 = vmatprep.subr.mxu0 %v33_v13  ;;  %v75_v30 = vld [vmem:[%s1109_s1 + $0x78] sm:$0xff]  ;;  %v331_v31 = vld [vmem:[%s1111_s3 + $0x28] sm:$0xff]  ;;  %v330_v35 = vld [vmem:[%s1111_s3 + $0x20] sm:$0xff] }
  0x11   :  { %156 = vmatpush1.msra.mxu0 %v32_v14  ;;  %v333_v32 = vld [vmem:[%s1111_s3 + $0x38] sm:$0xff]  ;;  %361 = vperm.xlu1 %802, %v331_v31   ;;  %v332_v36 = vld [vmem:[%s1111_s3 + $0x30] sm:$0xff]  ;;  %v326_v43 = vld [vmem:[%s1111_s3] sm:$0xff] }
  0x12   :  { %773 = vmatmul.mubr.msk.f32.vlgmr.msra.gmra.mxu0 %vm76_vm4, %v60_v15  ;;  %371 = vperm.xlu0 %801, %v333_v32   ;;  %v328_v39 = vld [vmem:[%s1111_s3 + $0x10] sm:$0xff]  ;;  %v329_v40 = vld [vmem:[%s1111_s3 + $0x18] sm:$0xff]  ;;  %v327_v44 = vld [vmem:[%s1111_s3 + $0x8] sm:$0xff] }
  0x13   :  { %195 = vmatprep.mubr.f32.mxu0 %v825_v5  ;;  %v510_v47 = vld [vmem:[%s1113_s5 + $0x18] sm:$0xff]  ;;  %v509_v48 = vld [vmem:[%s1113_s5 + $0x10] sm:$0xff]  ;;  %v508_v51 = vld [vmem:[%s1113_s5 + $0x8] sm:$0xff] }
  0x14   :  { %v507_v52 = vld [vmem:[%s1113_s5] sm:$0xff] }
  0x15   :  { %356 = vperm.xlu1 %802, %v330_v35   ;;  %v642_v55 = vld [vmem:[#allocation2] sm:$0x1] }
  0x16   :  { %774 = vmatmul.mubr.msk.f32.gmra.mxu0 %vm76_vm4, %v61_v16  ;;  %366 = vperm.xlu0 %801, %v332_v36  }
  0x17   :  { %201 = vmatprep.mubr.f32.mxu0 %v825_v5 }
  0x19   :  { %346 = vperm.xlu1 %802, %v328_v39  }
  0x1a   :  { %775 = vmatmul.mubr.msk.f32.gmra.mxu0 %vm76_vm4, %v62_v17  ;;  %351 = vperm.xlu0 %801, %v329_v40  }
  0x1b   :  { %207 = vmatprep.mubr.f32.mxu0 %v825_v5 }
  0x1d   :  { %336 = vperm.xlu1 %802, %v326_v43  }
  0x1e   :  { %776 = vmatmul.mubr.msk.f32.gmra.mxu0 %vm76_vm4, %v63_v18  ;;  %341 = vperm.xlu0 %801, %v327_v44  }
  0x1f   :  { %213 = vmatprep.mubr.f32.mxu0 %v825_v5 }
  0x21   :  { %523 = vperm.xlu1 %802, %v509_v48  }
  0x22   :  { %777 = vmatmul.mubr.msk.f32.gmra.mxu0 %vm76_vm4, %v64_v19  ;;  %528 = vperm.xlu0 %801, %v510_v47  }
  0x23   :  { %219 = vmatprep.mubr.f32.mxu0 %v825_v5 }
  0x25   :  { %513 = vperm.xlu1 %802, %v507_v52  }
  0x26   :  { %778 = vmatmul.mubr.msk.f32.gmra.mxu0 %vm76_vm4, %v65_v20  ;;  %518 = vperm.xlu0 %801, %v508_v51  }
  0x27   :  { %225 = vmatprep.mubr.f32.mxu0 %v825_v5 }
  0x2a   :  { %779 = vmatmul.mubr.msk.f32.gmra.mxu0 %vm76_vm4, %v66_v21  ;;  %645 = vperm.xlu0 %801, %v642_v55  }
  0x2b   :  { %231 = vmatprep.mubr.f32.mxu0 %v825_v5 }
  0x2e   :  { %780 = vmatmul.mubr.msk.f32.gmra.mxu0 %vm76_vm4, %v67_v22 }
  0x2f   :  { %237 = vmatprep.mubr.f32.mxu0 %v825_v5 }
  0x32   :  { %781 = vmatmul.mubr.msk.f32.gmra.mxu0 %vm76_vm4, %v68_v23 }
  0x33   :  { %243 = vmatprep.mubr.f32.mxu0 %v825_v5 }
  0x36   :  { %782 = vmatmul.mubr.msk.f32.gmra.mxu0 %vm76_vm4, %v69_v24 }
  0x37   :  { %249 = vmatprep.mubr.f32.mxu0 %v825_v5 }
  0x3a   :  { %783 = vmatmul.mubr.msk.f32.gmra.mxu0 %vm76_vm4, %v70_v25 }
  0x3b   :  { %255 = vmatprep.mubr.f32.mxu0 %v825_v5 }
  0x3e   :  { %784 = vmatmul.mubr.msk.f32.gmra.mxu0 %vm76_vm4, %v71_v26 }
  0x3f   :  { %261 = vmatprep.mubr.f32.mxu0 %v825_v5 }
  0x42   :  { %785 = vmatmul.mubr.msk.f32.gmra.mxu0 %vm76_vm4, %v72_v27 }
  0x43   :  { %267 = vmatprep.mubr.f32.mxu0 %v825_v5 }
  0x46   :  { %786 = vmatmul.mubr.msk.f32.gmra.mxu0 %vm76_vm4, %v73_v28 }
  0x47   :  { %273 = vmatprep.mubr.f32.mxu0 %v825_v5 }
  0x4a   :  { %787 = vmatmul.mubr.msk.f32.gmra.mxu0 %vm76_vm4, %v74_v29 }
  0x4b   :  { %279 = vmatprep.mubr.f32.mxu0 %v825_v5 }
  0x4e   :  { %788 = vmatmul.mubr.msk.f32.gmra.mxu0 %vm76_vm4, %v75_v30 }
  0x4f   :  { %720 = vmatprep.mubr.f32.mxu0 %v825_v5 }
  0xd2   :  { %v985_v34 = vpop.f32.mrf.mxu0 }
  0xd4   :  { %v993_v37 = vpop.f32.mrf.mxu0 }
  0xd6   :  { %v995_v38 = vpop.f32.mrf.mxu0 }
  0xd8   :  { %v1003_v41 = vpop.f32.mrf.mxu0 }
  0xda   :  { %v1005_v42 = vpop.f32.mrf.mxu0 }
  0xdb   :  { %v290_v55 = vmax.f32 %v1005_v42, 0.0  ;;  %v323_v42 = vld [vmem:[%s1110_s2 + $0x28] sm:$0xff] }
  0xdc   :  { %v1013_v45 = vpop.f32.mrf.mxu0 }
  0xdd   :  { %v291_v52 = vmax.f32 %v1013_v45, 0.0  ;;  %v318_v45 = vld [vmem:[%s1110_s2] sm:$0xff] }
  0xde   :  { %v1015_v46 = vpop.f32.mrf.mxu0 }
  0xdf   :  { %v292_v51 = vmax.f32 %v1015_v46, 0.0  ;;  %v324_v46 = vld [vmem:[%s1110_s2 + $0x30] sm:$0xff] }
  0xe0   :  { %v1023_v49 = vpop.f32.mrf.mxu0 }
  0xe1   :  { %v293_v48 = vmax.f32 %v1023_v49, 0.0  ;;  %v286_v49 = vmax.f32 %v985_v34, 0.0  ;;  %v320_v34 = vld [vmem:[%s1110_s2 + $0x10] sm:$0xff] }
  0xe2   :  { %v1025_v50 = vpop.f32.mrf.mxu0 }
  0xe3   :  { %v294_v47 = vmax.f32 %v1025_v50, 0.0  ;;  %v287_v50 = vmax.f32 %v993_v37, 0.0  ;;  %v321_v37 = vld [vmem:[%s1110_s2 + $0x18] sm:$0xff] }
  0xe4   :  { %v1033_v53 = vpop.f32.mrf.mxu0 }
  0xe5   :  { %v295_v44 = vmax.f32 %v1033_v53, 0.0  ;;  %v288_v53 = vmax.f32 %v995_v38, 0.0  ;;  %v319_v38 = vld [vmem:[%s1110_s2 + $0x8] sm:$0xff] }
  0xe6   :  { %v1035_v54 = vpop.f32.mrf.mxu0 }
  0xe7   :  { %v296_v43 = vmax.f32 %v1035_v54, 0.0  ;;  %v289_v54 = vmax.f32 %v1003_v41, 0.0  ;;  %v322_v41 = vld [vmem:[%s1110_s2 + $0x20] sm:$0xff] }
  0xe8   :  { %v1037_v56 = vpop.f32.mrf.mxu0 }
  0xe9   :  { %v297_v40 = vmax.f32 %v1037_v56, 0.0  ;;  %v325_v56 = vld [vmem:[%s1110_s2 + $0x38] sm:$0xff] }
  0xea   :  { %v227_v57 = vpop.f32.mrf.mxu0 }
  0xeb   :  { %v298_v39 = vmax.f32 %v227_v57, 0.0 }
  0xec   :  { %v229_v58 = vpop.f32.mrf.mxu0 }
  0xed   :  { %v299_v36 = vmax.f32 %v229_v58, 0.0 }
  0xee   :  { %v233_v59 = vpop.f32.mrf.mxu0 }
  0xef   :  { %v300_v35 = vmax.f32 %v233_v59, 0.0 }
  0xf0   :  { %v235_v60 = vpop.f32.mrf.mxu0 }
  0xf1   :  { %v301_v33 = vmax.f32 %v235_v60, 0.0 }
  0xf2   :  { %v239_v61 = vpop.f32.mrf.mxu0 }
  0xf3   :  { %v302_v32 = vmax.f32 %v239_v61, 0.0 }
  0xf4   :  { %v241_v62 = vpop.f32.mrf.mxu0 }
  0xf5   :  { %v303_v31 = vmax.f32 %v241_v62, 0.0 }
  0xf6   :  { %v245_v63 = vpop.f32.mrf.mxu0 }
  0xf7   :  { %v304_v30 = vmax.f32 %v245_v63, 0.0 }
  0xf8   :  { %v247_v0 = vpop.f32.mrf.mxu0 }
  0xf9   :  { %v305_v29 = vmax.f32 %v247_v0, 0.0 }
  0xfa   :  { %v251_v1 = vpop.f32.mrf.mxu0 }
  0xfb   :  { %v306_v28 = vmax.f32 %v251_v1, 0.0 }
  0xfc   :  { %v253_v3 = vpop.f32.mrf.mxu0 }
  0xfd   :  { %v307_v27 = vmax.f32 %v253_v3, 0.0 }
  0xfe   :  { %v257_v6 = vpop.f32.mrf.mxu0 }
  0xff   :  { %v308_v26 = vmax.f32 %v257_v6, 0.0 }
 0x100   :  { %v259_v7 = vpop.f32.mrf.mxu0 }
 0x101   :  { %v309_v25 = vmax.f32 %v259_v7, 0.0  ;;  %v372_v7 = vpop.permute.xlu0 %371 }
 0x102   :  { %v263_v8 = vpop.f32.mrf.mxu0 }
 0x103   :  { %v310_v24 = vmax.f32 %v263_v8, 0.0 }
 0x104   :  { %v265_v10 = vpop.f32.mrf.mxu0 }
 0x105   :  { %v311_v23 = vmax.f32 %v265_v10, 0.0  ;;  %v362_v10 = vpop.permute.xlu1 %361 }
 0x106   :  { %v269_v11 = vpop.f32.mrf.mxu0 }
 0x107   :  { %v312_v22 = vmax.f32 %v269_v11, 0.0 }
 0x108   :  { %v271_v12 = vpop.f32.mrf.mxu0 }
 0x109   :  { %v313_v21 = vmax.f32 %v271_v12, 0.0 }
 0x10a   :  { %v275_v13 = vpop.f32.mrf.mxu0 }
 0x10b   :  { %v314_v20 = vmax.f32 %v275_v13, 0.0  ;;  %v367_v13 = vpop.permute.xlu0 %366 }
 0x10c   :  { %v277_v14 = vpop.f32.mrf.mxu0 }
 0x10d   :  { %v315_v19 = vmax.f32 %v277_v14, 0.0 }
 0x10e   :  { %v281_v15 = vpop.f32.mrf.mxu0 }
 0x10f   :  { %v316_v18 = vmax.f32 %v281_v15, 0.0  ;;  %v357_v15 = vpop.permute.xlu1 %356 }
 0x110   :  { %v283_v16 = vpop.f32.mrf.mxu0 }
 0x111   :  { %v317_v17 = vmax.f32 %v283_v16, 0.0 }
 0x113   :  { %374 = vmatprep.subr.mxu1 %v317_v17 }
 0x114   :  { %375 = vmatpush1.msra.mxu1 %v316_v18 }
 0x115   :  { %376 = vmatprep.subr.mxu1 %v315_v19 }
 0x116   :  { %377 = vmatpush1.msra.mxu1 %v314_v20 }
 0x117   :  { %378 = vmatprep.subr.mxu1 %v313_v21  ;;  %v352_v21 = vpop.permute.xlu0 %351 }
 0x118   :  { %379 = vmatpush1.msra.mxu1 %v312_v22 }
 0x119   :  { %380 = vmatprep.subr.mxu1 %v311_v23 }
 0x11a   :  { %381 = vmatpush1.msra.mxu1 %v310_v24 }
 0x11b   :  { %382 = vmatprep.subr.mxu1 %v309_v25 }
 0x11c   :  { %383 = vmatpush1.msra.mxu1 %v308_v26  ;;  %v347_v26 = vpop.permute.xlu1 %346 }
 0x11d   :  { %384 = vmatprep.subr.mxu1 %v307_v27 }
 0x11e   :  { %385 = vmatpush1.msra.mxu1 %v306_v28 }
 0x11f   :  { %386 = vmatprep.subr.mxu1 %v305_v29 }
 0x120   :  { %387 = vmatpush1.msra.mxu1 %v304_v30 }
 0x121   :  { %388 = vmatprep.subr.mxu1 %v303_v31 }
 0x122   :  { %389 = vmatpush1.msra.mxu1 %v302_v32 }
 0x123   :  { %390 = vmatprep.subr.mxu1 %v301_v33 }
 0x124   :  { %391 = vmatpush1.msra.mxu1 %v300_v35 }
 0x125   :  { %392 = vmatprep.subr.mxu1 %v299_v36  ;;  %v342_v36 = vpop.permute.xlu0 %341 }
 0x126   :  { %393 = vmatpush1.msra.mxu1 %v298_v39 }
 0x127   :  { %394 = vmatprep.subr.mxu1 %v297_v40 }
 0x128   :  { %395 = vmatpush1.msra.mxu1 %v296_v43 }
 0x129   :  { %396 = vmatprep.subr.mxu1 %v295_v44 }
 0x12a   :  { %397 = vmatpush1.msra.mxu1 %v294_v47  ;;  %v337_v47 = vpop.permute.xlu1 %336 }
 0x12b   :  { %398 = vmatprep.subr.mxu1 %v293_v48 }
 0x12c   :  { %399 = vmatpush1.msra.mxu1 %v292_v51 }
 0x12d   :  { %400 = vmatprep.subr.mxu1 %v291_v52 }
 0x12e   :  { %401 = vmatpush1.msra.mxu1 %v290_v55 }
 0x12f   :  { %402 = vmatprep.subr.mxu1 %v289_v54 }
 0x130   :  { %403 = vmatpush1.msra.mxu1 %v288_v53 }
 0x131   :  { %404 = vmatprep.subr.mxu1 %v287_v50 }
 0x132   :  { %405 = vmatpush1.msra.mxu1 %v286_v49 }
 0x133   :  { %439 = vmatmul.mubr.f32.vlgmr.msra.gmra.mxu1 %v318_v45 }
 0x134   :  { %444 = vmatprep.mubr.f32.mxu1 %v825_v5 }
 0x137   :  { %445 = vmatmul.mubr.f32.gmra.mxu1 %v319_v38 }
 0x138   :  { %450 = vmatprep.mubr.f32.mxu1 %v825_v5 }
 0x13b   :  { %451 = vmatmul.mubr.f32.gmra.mxu1 %v320_v34 }
 0x13c   :  { %456 = vmatprep.mubr.f32.mxu1 %v825_v5 }
 0x13f   :  { %457 = vmatmul.mubr.f32.gmra.mxu1 %v321_v37 }
 0x140   :  { %462 = vmatprep.mubr.f32.mxu1 %v825_v5 }
 0x143   :  { %463 = vmatmul.mubr.f32.gmra.mxu1 %v322_v41  ;;  %v503_v41 = vld [vmem:[%s1112_s4] sm:$0xff] }
 0x144   :  { %468 = vmatprep.mubr.f32.mxu1 %v825_v5 }
 0x147   :  { %469 = vmatmul.mubr.f32.gmra.mxu1 %v323_v42  ;;  %v504_v42 = vld [vmem:[%s1112_s4 + $0x8] sm:$0xff] }
 0x148   :  { %474 = vmatprep.mubr.f32.mxu1 %v825_v5 }
 0x14b   :  { %475 = vmatmul.mubr.f32.gmra.mxu1 %v324_v46  ;;  %v505_v46 = vld [vmem:[%s1112_s4 + $0x10] sm:$0xff] }
 0x14c   :  { %480 = vmatprep.mubr.f32.mxu1 %v825_v5 }
 0x14f   :  { %481 = vmatmul.mubr.f32.gmra.mxu1 %v325_v56  ;;  %v506_v56 = vld [vmem:[%s1112_s4 + $0x18] sm:$0xff] }
 0x150   :  { %608 = vmatprep.mubr.f32.mxu1 %v825_v5 }
 0x1f3   :  { %v440_v57 = vpop.f32.mrf.mxu1 }
 0x1f4   :  { %v441_v50 = vadd.f32 %v440_v57, %v337_v47 }
 0x1f5   :  { %v442_v58 = vpop.f32.mrf.mxu1 }
 0x1f6   :  { %v443_v54 = vadd.f32 %v442_v58, %v337_v47  ;;  %v487_v37 = vmax.f32 %v441_v50, 0.0 }
 0x1f7   :  { %v446_v59 = vpop.f32.mrf.mxu1 }
 0x1f8   :  { %v447_v52 = vadd.f32 %v446_v59, %v342_v36  ;;  %v488_v34 = vmax.f32 %v443_v54, 0.0 }
 0x1f9   :  { %v448_v60 = vpop.f32.mrf.mxu1 }
 0x1fa   :  { %v449_v48 = vadd.f32 %v448_v60, %v342_v36  ;;  %v489_v38 = vmax.f32 %v447_v52, 0.0 }
 0x1fb   :  { %v452_v61 = vpop.f32.mrf.mxu1 }
 0x1fc   :  { %v453_v43 = vadd.f32 %v452_v61, %v347_v26  ;;  %v490_v45 = vmax.f32 %v449_v48, 0.0 }
 0x1fd   :  { %v454_v62 = vpop.f32.mrf.mxu1 }
 0x1fe   :  { %v455_v39 = vadd.f32 %v454_v62, %v347_v26  ;;  %v491_v49 = vmax.f32 %v453_v43, 0.0  ;;  %v529_v62 = vpop.permute.xlu0 %528 }
 0x1ff   :  { %v458_v63 = vpop.f32.mrf.mxu1 }
 0x200   :  { %v459_v33 = vadd.f32 %v458_v63, %v352_v21  ;;  %v492_v53 = vmax.f32 %v455_v39, 0.0 }
 0x201   :  { %v460_v0 = vpop.f32.mrf.mxu1 }
 0x202   :  { %v461_v31 = vadd.f32 %v460_v0, %v352_v21  ;;  %v493_v55 = vmax.f32 %v459_v33, 0.0  ;;  %v524_v0 = vpop.permute.xlu1 %523 }
 0x203   :  { %v464_v1 = vpop.f32.mrf.mxu1 }
 0x204   :  { %v465_v29 = vadd.f32 %v464_v1, %v357_v15  ;;  %v494_v51 = vmax.f32 %v461_v31, 0.0 }
 0x205   :  { %v466_v3 = vpop.f32.mrf.mxu1 }
 0x206   :  { %v467_v27 = vadd.f32 %v466_v3, %v357_v15  ;;  %v495_v44 = vmax.f32 %v465_v29, 0.0 }
 0x207   :  { %v470_v6 = vpop.f32.mrf.mxu1 }
 0x208   :  { %v471_v24 = vadd.f32 %v470_v6, %v362_v10  ;;  %v496_v40 = vmax.f32 %v467_v27, 0.0 }
 0x209   :  { %v472_v8 = vpop.f32.mrf.mxu1 }
 0x20a   :  { %v473_v22 = vadd.f32 %v472_v8, %v362_v10  ;;  %v497_v35 = vmax.f32 %v471_v24, 0.0  ;;  %v519_v10 = vpop.permute.xlu0 %518  ;;  %v641_v24 = vld [vmem:[%s1114_s6] sm:$0x1]  ;;  %s756_s6 = sshll.u32 %s829_s15, 4  ;;  %s757_s6 = int_to_ptr.vmem [resolvable:$true] %s756_s6 }
 0x20b   :  { %v476_v11 = vpop.f32.mrf.mxu1  ;;  %s803_s0 = scalar_lea.vmem %s757_s6, 32  ;;  %p808_p1 = scmp.lt.s32.totalorder %s757_s6, %s757_s6 }
 0x20c   :  { %v477_v20 = vadd.f32 %v476_v11, %v367_v13  ;;  %v498_v32 = vmax.f32 %v473_v22, 0.0  ;;  %p804_p0 = scmp.ne.s32.totalorder %s757_s6, %s803_s0  ;;  %p809_p2 = scmp.lt.s32.totalorder %s803_s0, %s803_s0 }
 0x20d   :  { %v478_v12 = vpop.f32.mrf.mxu1 }
 0x20e   :  { %v479_v18 = vadd.f32 %v478_v12, %v367_v13  ;;  %v499_v30 = vmax.f32 %v477_v20, 0.0  ;;  %v514_v13 = vpop.permute.xlu1 %513  ;;  %v646_v27 = vpop.permute.xlu0 %645  ;;  %p810_p3 = por %p809_p2, %p808_p1 }
 0x20f   :  { %v482_v14 = vpop.f32.mrf.mxu1 }
 0x210   :  { %v483_v16 = vadd.f32 %v482_v14, %v372_v7  ;;  %v500_v28 = vmax.f32 %v479_v18, 0.0  ;;  %p811_p4 = pnand %p810_p3, %p804_p0 }
 0x211   :  { %v484_v17 = vpop.f32.mrf.mxu1 }
 0x212   :  { %v485_v19 = vadd.f32 %v484_v17, %v372_v7  ;;  %v501_v25 = vmax.f32 %v483_v16, 0.0 }
 0x214   :  { %v502_v23 = vmax.f32 %v485_v19, 0.0 }
 0x216   :  { %560 = vmatprep.subr.mxu1 %v502_v23 }
 0x217   :  { %561 = vmatpush1.msra.mxu1 %v501_v25  ;;  %v828_v25 = vmov 1966171168  }
 0x218   :  { %562 = vmatprep.subr.mxu1 %v500_v28  ;;  %v731_v26 = vunpack.c.l.s4 %v828_v25 }
 0x219   :  { %563 = vmatpush1.msra.mxu1 %v499_v30  ;;  %v651_v30 = vrot.slane %v646_v27, %v42_v9 }
 0x21a   :  { %564 = vmatprep.subr.mxu1 %v498_v32  ;;  %v732_v28 = vunpack.c.0.s8 %v731_v26 }
 0x21b   :  { %565 = vmatpush1.msra.mxu1 %v497_v35 }
 0x21c   :  { %566 = vmatprep.subr.mxu1 %v496_v40  ;;  %v735_v35 = vsub.s32 %v732_v28, %v882_v4 }
 0x21d   :  { %567 = vmatpush1.msra.mxu1 %v495_v44 }
 0x21e   :  { %568 = vmatprep.subr.mxu1 %v494_v51 }
 0x21f   :  { %569 = vmatpush1.msra.mxu1 %v493_v55 }
 0x220   :  { %570 = vmatprep.subr.mxu1 %v492_v53 }
 0x221   :  { %571 = vmatpush1.msra.mxu1 %v491_v49 }
 0x222   :  { %572 = vmatprep.subr.mxu1 %v490_v45 }
 0x223   :  { %573 = vmatpush1.msra.mxu1 %v489_v38 }
 0x224   :  { %574 = vmatprep.subr.mxu1 %v488_v34 }
 0x225   :  { %575 = vmatpush1.msra.mxu1 %v487_v37 }
 0x226   :  { %789 = vmatmul.mubr.msk.f32.vlgmr.msra.gmra.mxu1 %vm531_vm5, %v503_v41 }
 0x227   :  { %614 = vmatprep.mubr.f32.mxu1 %v825_v5 }
 0x22a   :  { %790 = vmatmul.mubr.msk.f32.gmra.mxu1 %vm531_vm5, %v504_v42 }
 0x22b   :  { %620 = vmatprep.mubr.f32.mxu1 %v825_v5 }
 0x22e   :  { %791 = vmatmul.mubr.msk.f32.gmra.mxu1 %vm531_vm5, %v505_v46 }
 0x22f   :  { %626 = vmatprep.mubr.f32.mxu1 %v825_v5 }
 0x232   :  { %792 = vmatmul.mubr.msk.f32.gmra.mxu1 %vm531_vm5, %v506_v56 }
 0x2e6   :  { %v610_v57 = vpop.f32.mrf.mxu1 }
 0x2e7   :  { %v611_v18 = vadd.f32 %v610_v57, %v514_v13 }
 0x2e8   :  { %v612_v58 = vpop.f32.mrf.mxu1 }
 0x2e9   :  { %v613_v16 = vadd.f32 %v612_v58, %v514_v13  ;;  %v633_v23 = vmax.f32 %v611_v18, 0.0 }
 0x2ea   :  { %v616_v59 = vpop.f32.mrf.mxu1 }
 0x2eb   :  { %v617_v14 = vadd.f32 %v616_v59, %v519_v10  ;;  %v634_v22 = vmax.f32 %v613_v16, 0.0 }
 0x2ec   :  { %v618_v60 = vpop.f32.mrf.mxu1 }
 0x2ed   :  { %v619_v11 = vadd.f32 %v618_v60, %v519_v10  ;;  %v635_v21 = vmax.f32 %v617_v14, 0.0 }
 0x2ee   :  { %v622_v61 = vpop.f32.mrf.mxu1 }
 0x2ef   :  { %v623_v5 = vadd.f32 %v622_v61, %v524_v0  ;;  %v636_v20 = vmax.f32 %v619_v11, 0.0 }
 0x2f0   :  { %v624_v63 = vpop.f32.mrf.mxu1 }
 0x2f1   :  { %v625_v7 = vadd.f32 %v624_v63, %v524_v0  ;;  %v637_v19 = vmax.f32 %v623_v5, 0.0 }
 0x2f2   :  { %v628_v1 = vpop.f32.mrf.mxu1 }
 0x2f3   :  { %v629_v3 = vadd.f32 %v628_v1, %v529_v62  ;;  %v638_v17 = vmax.f32 %v625_v7, 0.0 }
 0x2f4   :  { %v630_v6 = vpop.f32.mrf.mxu1 }
 0x2f5   :  { %v631_v8 = vadd.f32 %v630_v6, %v529_v62  ;;  %v639_v15 = vmax.f32 %v629_v3, 0.0 }
 0x2f7   :  { %v640_v12 = vmax.f32 %v631_v8, 0.0 }
 0x2f9   :  { %680 = vmatprep.subr.mxu0 %v640_v12 }
 0x2fa   :  { %681 = vmatpush1.msra.mxu0 %v639_v15 }
 0x2fb   :  { %682 = vmatprep.subr.mxu0 %v638_v17 }
 0x2fc   :  { %683 = vmatpush1.msra.mxu0 %v637_v19 }
 0x2fd   :  { %684 = vmatprep.subr.mxu0 %v636_v20 }
 0x2fe   :  { %685 = vmatpush1.msra.mxu0 %v635_v21 }
 0x2ff   :  { %686 = vmatprep.subr.mxu0 %v634_v22 }
 0x300   :  { %687 = vmatpush1.msra.mxu0 %v633_v23 }
 0x301   :  { %793 = vmatmul.mubr.msk.f32.vlgmr.msra.gmra.mxu0 %vm652_vm6, %v641_v24 }
 0x3c1   :  { %v722_v29 = vpop.f32.mrf.mxu0 }
 0x3c2   :  { %v723_v32 = vadd.f32 %v722_v29, %v651_v30 }
 0x3c3   :  { %v724_v31 = vpop.f32.mrf.mxu0 }
 0x3c4   :  { %v725_v33 = vadd.f32 %v724_v31, %v651_v30 }
 0x3c6   :  { %v729_v36 = vcombine.low %v723_v32, %v725_v33 }
 0x3c8   :  { %v736_v39 = vrot.slane %v729_v36, %v735_v35 }
 0x3ca   :  { %v743_v40 = vrot.slane %v736_v39, %v735_v35 }
 0x3cc   :  { %749 = vst.msk [vmem:[#allocation3] sm:$0x3] %vm747_vm7, %v743_v40 }
 0x3cd   :  { %814 = shalt.err (!%p811_p4)
}
 0x3ce   :  { %759 = dma.vmem_to_hbm [thread:$0]  %s757_s6, 32, %s1116_s8, [#allocation4]  }
 0x3cf   :  { %823 = dma.done.wait [#allocation4], 32  }
 0x3d0   :  { %824 = vsyncadd [#allocation4], 4294967264 }
 0x3d1   :  { %763 = vsyncpa [#allocation4], 1 }

</bundles_post_ra>
